<compile_context>
chip_gen: v6e
topology: v6e:2x2x1
jax: 0.10.0
libtpu: 0.0.40
codegen_flags: <defaults>
</compile_context>

<pallas_src>
import functools

import jax
import jax.numpy as jnp
from jax.experimental import pallas as pl
from jax.experimental.pallas import tpu as pltpu


def gru_kernel(maxlen_ref, x_ref, whh_ref, misc_ref, prob_ref, h_ref, *, T, Bp, H):
    """One invocation: unrolled recurrence (with early exit) + output head.

    maxlen_ref : SMEM (1,)  int32   scalar-prefetched max(src_len)
    x_ref      : VMEM (T*Bp, GP) f32  fused gi = emb@W_ih+biases, mask in lanes [3H:4H]
    whh_ref    : VMEM (H, GP) bf16    concatenated (r,z,n) hidden weights, zero-padded
    misc_ref   : VMEM (3, H) f32      row0=b_hn, row1=w_out, row2[0]=b_out
    prob_ref   : VMEM (Bp, 1) f32     output
    h_ref      : VMEM (Bp, H) f32     hidden-state scratch
    """
    G = 3 * H
    whh = whh_ref[...]                                      # (H, GP) bf16, loaded once
    bhn = jnp.broadcast_to(misc_ref[0:1, :], (Bp, H))       # hoisted broadcast (done once)
    max_len = maxlen_ref[0]

    h_ref[...] = jnp.zeros((Bp, H), jnp.float32)

    def step(t):
        @pl.when(max_len > t)                               # skip dead tail steps
        def _():
            h = h_ref[...]                                  # (Bp, H)
            blk = x_ref[t * Bp:(t + 1) * Bp, :]             # (Bp, GP), sublane-aligned
            # Single MXU push per step: bf16 operands, f32 accumulation.
            gh = jnp.dot(h.astype(jnp.bfloat16), whh,
                         preferred_element_type=jnp.float32)  # (Bp, GP)
            a = blk + gh                                    # full-width add; mask lanes keep blk
            # PyTorch GRU gate order: r (reset), z (update), n (new)
            rz = jax.nn.sigmoid(a[:, 0:2 * H])              # one EUP push for r and z
            r = rz[:, 0:H]
            z = rz[:, H:2 * H]
            n = jnp.tanh(blk[:, 2 * H:3 * H] + r * (gh[:, 2 * H:3 * H] + bhn))
            h_new = n + z * (h - n)                         # == (1-z)*n + z*h
            # Packed-sequence semantics: freeze hidden once t >= src_len[b].
            m = a[:, G:G + H]                               # 0/1 mask stored in padding lanes
            h_ref[...] = jnp.where(m > 0.5, h_new, h)

    for t in range(T):
        step(t)

    # Output head: (H -> 1) as VPU multiply + lane reduce, then sigmoid.
    h = h_ref[...]
    wout = misc_ref[1:2, :]                                 # (1, H)
    bout = misc_ref[2:3, 0:1]                               # (1, 1)
    logits = jnp.sum(h * wout, axis=-1, keepdims=True) + bout
    prob_ref[...] = jax.nn.sigmoid(logits)


@jax.jit
def model_forward(src, src_len, params):
    """src: (T, B) int32 tokens; src_len: (B,) int32 (sorted descending)."""
    emb = params["embedding"].astype(jnp.float32)           # (V, E)
    T, B = src.shape
    H = params["w_hh"].shape[-1]
    G = 3 * H
    GP = ((G + 127) // 128) * 128
    if GP - G < H:                       # need room in padding lanes for the mask
        GP = ((G + H + 127) // 128) * 128
    Bp = ((B + 7) // 8) * 8              # sublane-align the batch

    w_ih, w_hh = params["w_ih"], params["w_hh"]
    b_ih, b_hh = params["b_ih"], params["b_hh"]

    wih_cat = jnp.concatenate([w_ih[0], w_ih[1], w_ih[2]], axis=-1)   # (E, G)
    whh_cat = jnp.concatenate([w_hh[0], w_hh[1], w_hh[2]], axis=-1)   # (H, G)
    bih_cat = jnp.concatenate([b_ih[0], b_ih[1], b_ih[2]], axis=-1)   # (1, G)

    # b_hr / b_hz sit outside the reset gate -> fold into the input-side bias;
    # b_hn must stay on the hidden side (inside r * (.)).
    bias_fold = bih_cat + jnp.concatenate(
        [b_hh[0], b_hh[1], jnp.zeros((1, H), jnp.float32)], axis=-1)  # (1, G)

    # Fold Embedding + W_ih + biases into one lookup table (V, G); gather in XLA.
    table = emb @ wih_cat + bias_fold

    lens = src_len.astype(jnp.int32)
    src_p = jnp.pad(src.astype(jnp.int32), ((0, 0), (0, Bp - B)))
    lens_p = jnp.pad(lens, (0, Bp - B))                     # padded rows: len 0 -> frozen at 0

    gi = jnp.take(table, src_p, axis=0)                     # (T, Bp, G)
    mask = (lens_p[None, :] > jnp.arange(T, dtype=jnp.int32)[:, None])        # (T, Bp)
    mask_h = jnp.broadcast_to(mask[:, :, None].astype(jnp.float32), (T, Bp, H))
    packed = jnp.concatenate([gi, mask_h], axis=-1)         # (T, Bp, G+H)
    packed = jnp.pad(packed, ((0, 0), (0, 0), (0, GP - (G + H))))
    x2d = packed.reshape(T * Bp, GP)                        # (T*Bp, GP)

    # Hidden-side gate weights: concatenated, zero-padded, pre-cast to bf16 (MXU operand).
    whh_p = jnp.pad(whh_cat, ((0, 0), (0, GP - G))).astype(jnp.bfloat16)      # (H, GP)

    # Pack the tiny remaining params into one block: b_hn / w_out / b_out.
    bout_row = jnp.zeros((1, H), jnp.float32).at[0, 0].set(params["b_out"][0, 0])
    misc = jnp.concatenate([b_hh[2], params["w_out"].T, bout_row], axis=0)    # (3, H)

    max_len = jnp.max(lens).reshape(1).astype(jnp.int32)    # scalar-prefetch early exit

    kernel = functools.partial(gru_kernel, T=T, Bp=Bp, H=H)

    prob_p = pl.pallas_call(
        kernel,
        out_shape=jax.ShapeDtypeStruct((Bp, 1), jnp.float32),
        grid_spec=pltpu.PrefetchScalarGridSpec(
            num_scalar_prefetch=1,
            grid=(1,),                                      # whole model in one step
            in_specs=[
                pl.BlockSpec((T * Bp, GP), lambda i, ml: (0, 0)),   # fused gi + mask
                pl.BlockSpec((H, GP), lambda i, ml: (0, 0)),        # W_hh (bf16, padded)
                pl.BlockSpec((3, H), lambda i, ml: (0, 0)),         # b_hn / w_out / b_out
            ],
            out_specs=pl.BlockSpec((Bp, 1), lambda i, ml: (0, 0)),
            scratch_shapes=[pltpu.VMEM((Bp, H), jnp.float32)],      # hidden state
        ),
        compiler_params=pltpu.CompilerParams(
            dimension_semantics=("arbitrary",),             # serial recurrence
        ),
    )(max_len, x2d, whh_p, misc)
    return prob_p[:B]


def init_params(key, input_dim, emb_dim, hid_dim):
    """Deterministic synthetic params matching PyTorch module shapes (n_layers=1)."""
    k_emb, k_wih, k_whh, k_bih, k_bhh, k_wout, k_bout = jax.random.split(key, 7)
    bound = 1.0 / jnp.sqrt(hid_dim)
    return {
        # nn.Embedding(input_dim, emb_dim): N(0, 1)
        "embedding": jax.random.normal(k_emb, (input_dim, emb_dim), jnp.float32),
        # nn.GRU(emb_dim, hid_dim, 1): U(-1/sqrt(H), 1/sqrt(H)), gate order (r, z, n)
        "w_ih": jax.random.uniform(k_wih, (3, emb_dim, hid_dim), jnp.float32, -bound, bound),
        "w_hh": jax.random.uniform(k_whh, (3, hid_dim, hid_dim), jnp.float32, -bound, bound),
        "b_ih": jax.random.uniform(k_bih, (3, 1, hid_dim), jnp.float32, -bound, bound),
        "b_hh": jax.random.uniform(k_bhh, (3, 1, hid_dim), jnp.float32, -bound, bound),
        # nn.Linear(hid_dim, 1)
        "w_out": jax.random.uniform(k_wout, (hid_dim, 1), jnp.float32, -bound, bound),
        "b_out": jax.random.uniform(k_bout, (1, 1), jnp.float32, -bound, bound),
    }


if __name__ == "__main__":
    INPUT_DIM = 20    # vocab size
    EMB_DIM = 16
    HID_DIM = 32
    N_LAYERS = 1
    T = 8             # max sequence length
    B = 10            # BATCHSIZE

    key = jax.random.PRNGKey(0)
    k_params, k_src = jax.random.split(key)

    params = init_params(k_params, INPUT_DIM, EMB_DIM, HID_DIM)

    # src: (T, B) int tokens; src_len sorted descending (pack_padded_sequence default)
    src = jax.random.randint(k_src, (T, B), 0, INPUT_DIM, dtype=jnp.int32)
    src_len = jnp.sort(
        jax.random.randint(jax.random.PRNGKey(1), (B,), 1, T + 1, dtype=jnp.int32)
    )[::-1]

    prob = model_forward(src, src_len, params)
    prob = jax.block_until_ready(prob)

    assert prob.shape == (B, 1)
    assert bool(jnp.all((prob >= 0.0) & (prob <= 1.0)))
    print("KERNEL_OK")
</pallas_src>

<mosaic_0001>
module attributes {stable_mosaic.version = 11 : i64} {
  func.func @gru_kernel(%arg0: i32, %arg1: memref<1xi32, #tpu.memory_space<smem>>, %arg2: memref<128x128xf32, #tpu.memory_space<vmem>>, %arg3: memref<32x128xbf16, #tpu.memory_space<vmem>>, %arg4: memref<3x32xf32, #tpu.memory_space<vmem>>, %arg5: memref<16x1xf32, #tpu.memory_space<vmem>>, %arg6: memref<16x32xf32, #tpu.memory_space<vmem>>) attributes {dimension_semantics = [#tpu.dimension_semantics<arbitrary>], iteration_bounds = array<i64: 1>, scalar_prefetch = 1 : i64, scratch_operands = 1 : i64, tpu.core_type = #tpu.core_type<tc>, window_params = [{pipeline_mode = #tpu.pipeline_mode<synchronous>, transform_indices = @transform_0, window_bounds = array<i64: 128, 128>}, {pipeline_mode = #tpu.pipeline_mode<synchronous>, transform_indices = @transform_1, window_bounds = array<i64: 32, 128>}, {pipeline_mode = #tpu.pipeline_mode<synchronous>, transform_indices = @transform_2, window_bounds = array<i64: 3, 32>}, {pipeline_mode = #tpu.pipeline_mode<synchronous>, transform_indices = @transform_3, window_bounds = array<i64: 16, 1>}]} {
    %c0 = arith.constant 0 : index
    %c0_0 = arith.constant 0 : index
    %0 = vector.load %arg3[%c0, %c0_0] : memref<32x128xbf16, #tpu.memory_space<vmem>>, vector<32x128xbf16>
    %c0_1 = arith.constant 0 : index
    %c0_2 = arith.constant 0 : index
    %1 = vector.load %arg4[%c0_1, %c0_2] : memref<3x32xf32, #tpu.memory_space<vmem>>, vector<1x32xf32>
    %2 = vector.shape_cast %1 : vector<1x32xf32> to vector<1x32xf32>
    %3 = vector.broadcast %2 : vector<1x32xf32> to vector<16x32xf32>
    %c0_3 = arith.constant 0 : index
    %4 = memref.load %arg1[%c0_3] : memref<1xi32, #tpu.memory_space<smem>>
    %cst = arith.constant 0.000000e+00 : f32
    %5 = vector.broadcast %cst : f32 to vector<16x32xf32>
    %c0_4 = arith.constant 0 : index
    %c0_5 = arith.constant 0 : index
    %6 = vector.load %arg6[%c0_4, %c0_5] : memref<16x32xf32, #tpu.memory_space<vmem>>, vector<16x32xf32>
    tpu.vector_store %arg6[%c0_4, %c0_5], %5 {strides = array<i32>} : memref<16x32xf32, #tpu.memory_space<vmem>>, vector<16x32xf32>,
    %c0_i32 = arith.constant 0 : i32
    %7 = arith.cmpi sgt, %4, %c0_i32 : i32
    %8 = arith.extui %7 : i1 to i32
    %c0_i32_6 = arith.constant 0 : i32
    %9 = arith.cmpi ne, %8, %c0_i32_6 : i32
    scf.if %9 {
      %c0_22 = arith.constant 0 : index
      %c0_23 = arith.constant 0 : index
      %46 = vector.load %arg6[%c0_22, %c0_23] : memref<16x32xf32, #tpu.memory_space<vmem>>, vector<16x32xf32>
      %c0_24 = arith.constant 0 : index
      %c0_25 = arith.constant 0 : index
      %47 = vector.load %arg2[%c0_24, %c0_25] : memref<128x128xf32, #tpu.memory_space<vmem>>, vector<16x128xf32>
      %48 = arith.truncf %46 : vector<16x32xf32> to vector<16x32xbf16>
      %cst_26 = arith.constant dense<0.000000e+00> : vector<16x128xf32>
      %49 = tpu.matmul %48, %0, %cst_26 {dimension_numbers = #tpu.dot_dimension_numbers<[1], [0], [0], [1], [0, 0, 1, 1], [], []>} : vector<16x32xbf16>, vector<32x128xbf16>, vector<16x128xf32> -> vector<16x128xf32>
      %50 = arith.addf %47, %49 : vector<16x128xf32>
      %51 = vector.extract_strided_slice %50 {offsets = [0, 0], sizes = [16, 64], strides = [1, 1]} : vector<16x128xf32> to vector<16x64xf32>
      %52 = arith.negf %51 : vector<16x64xf32>
      %53 = math.exp %52 : vector<16x64xf32>
      %cst_27 = arith.constant 1.000000e+00 : f32
      %54 = vector.broadcast %cst_27 : f32 to vector<16x64xf32>
      %55 = arith.addf %54, %53 : vector<16x64xf32>
      %56 = arith.divf %54, %55 : vector<16x64xf32>
      %57 = vector.extract_strided_slice %56 {offsets = [0, 0], sizes = [16, 32], strides = [1, 1]} : vector<16x64xf32> to vector<16x32xf32>
      %58 = vector.extract_strided_slice %56 {offsets = [0, 32], sizes = [16, 32], strides = [1, 1]} : vector<16x64xf32> to vector<16x32xf32>
      %59 = vector.extract_strided_slice %47 {offsets = [0, 64], sizes = [16, 32], strides = [1, 1]} : vector<16x128xf32> to vector<16x32xf32>
      %60 = vector.extract_strided_slice %49 {offsets = [0, 64], sizes = [16, 32], strides = [1, 1]} : vector<16x128xf32> to vector<16x32xf32>
      %61 = arith.addf %60, %3 : vector<16x32xf32>
      %62 = arith.mulf %57, %61 : vector<16x32xf32>
      %63 = arith.addf %59, %62 : vector<16x32xf32>
      %64 = math.tanh %63 : vector<16x32xf32>
      %65 = arith.subf %46, %64 : vector<16x32xf32>
      %66 = arith.mulf %58, %65 : vector<16x32xf32>
      %67 = arith.addf %64, %66 : vector<16x32xf32>
      %68 = vector.extract_strided_slice %50 {offsets = [0, 96], sizes = [16, 32], strides = [1, 1]} : vector<16x128xf32> to vector<16x32xf32>
      %cst_28 = arith.constant 5.000000e-01 : f32
      %69 = vector.broadcast %cst_28 : f32 to vector<16x32xf32>
      %70 = arith.cmpf ogt, %68, %69 : vector<16x32xf32>
      %71 = arith.select %70, %67, %46 : vector<16x32xi1>, vector<16x32xf32>
      %c0_29 = arith.constant 0 : index
      %c0_30 = arith.constant 0 : index
      %72 = vector.load %arg6[%c0_29, %c0_30] : memref<16x32xf32, #tpu.memory_space<vmem>>, vector<16x32xf32>
      tpu.vector_store %arg6[%c0_29, %c0_30], %71 {strides = array<i32>} : memref<16x32xf32, #tpu.memory_space<vmem>>, vector<16x32xf32>,
    } else {
    }
    %c1_i32 = arith.constant 1 : i32
    %10 = arith.cmpi sgt, %4, %c1_i32 : i32
    %11 = arith.extui %10 : i1 to i32
    %c0_i32_7 = arith.constant 0 : i32
    %12 = arith.cmpi ne, %11, %c0_i32_7 : i32
    scf.if %12 {
      %c0_22 = arith.constant 0 : index
      %c0_23 = arith.constant 0 : index
      %46 = vector.load %arg6[%c0_22, %c0_23] : memref<16x32xf32, #tpu.memory_space<vmem>>, vector<16x32xf32>
      %c16 = arith.constant 16 : index
      %c0_24 = arith.constant 0 : index
      %47 = vector.load %arg2[%c16, %c0_24] : memref<128x128xf32, #tpu.memory_space<vmem>>, vector<16x128xf32>
      %48 = arith.truncf %46 : vector<16x32xf32> to vector<16x32xbf16>
      %cst_25 = arith.constant dense<0.000000e+00> : vector<16x128xf32>
      %49 = tpu.matmul %48, %0, %cst_25 {dimension_numbers = #tpu.dot_dimension_numbers<[1], [0], [0], [1], [0, 0, 1, 1], [], []>} : vector<16x32xbf16>, vector<32x128xbf16>, vector<16x128xf32> -> vector<16x128xf32>
      %50 = arith.addf %47, %49 : vector<16x128xf32>
      %51 = vector.extract_strided_slice %50 {offsets = [0, 0], sizes = [16, 64], strides = [1, 1]} : vector<16x128xf32> to vector<16x64xf32>
      %52 = arith.negf %51 : vector<16x64xf32>
      %53 = math.exp %52 : vector<16x64xf32>
      %cst_26 = arith.constant 1.000000e+00 : f32
      %54 = vector.broadcast %cst_26 : f32 to vector<16x64xf32>
      %55 = arith.addf %54, %53 : vector<16x64xf32>
      %56 = arith.divf %54, %55 : vector<16x64xf32>
      %57 = vector.extract_strided_slice %56 {offsets = [0, 0], sizes = [16, 32], strides = [1, 1]} : vector<16x64xf32> to vector<16x32xf32>
      %58 = vector.extract_strided_slice %56 {offsets = [0, 32], sizes = [16, 32], strides = [1, 1]} : vector<16x64xf32> to vector<16x32xf32>
      %59 = vector.extract_strided_slice %47 {offsets = [0, 64], sizes = [16, 32], strides = [1, 1]} : vector<16x128xf32> to vector<16x32xf32>
      %60 = vector.extract_strided_slice %49 {offsets = [0, 64], sizes = [16, 32], strides = [1, 1]} : vector<16x128xf32> to vector<16x32xf32>
      %61 = arith.addf %60, %3 : vector<16x32xf32>
      %62 = arith.mulf %57, %61 : vector<16x32xf32>
      %63 = arith.addf %59, %62 : vector<16x32xf32>
      %64 = math.tanh %63 : vector<16x32xf32>
      %65 = arith.subf %46, %64 : vector<16x32xf32>
      %66 = arith.mulf %58, %65 : vector<16x32xf32>
      %67 = arith.addf %64, %66 : vector<16x32xf32>
      %68 = vector.extract_strided_slice %50 {offsets = [0, 96], sizes = [16, 32], strides = [1, 1]} : vector<16x128xf32> to vector<16x32xf32>
      %cst_27 = arith.constant 5.000000e-01 : f32
      %69 = vector.broadcast %cst_27 : f32 to vector<16x32xf32>
      %70 = arith.cmpf ogt, %68, %69 : vector<16x32xf32>
      %71 = arith.select %70, %67, %46 : vector<16x32xi1>, vector<16x32xf32>
      %c0_28 = arith.constant 0 : index
      %c0_29 = arith.constant 0 : index
      %72 = vector.load %arg6[%c0_28, %c0_29] : memref<16x32xf32, #tpu.memory_space<vmem>>, vector<16x32xf32>
      tpu.vector_store %arg6[%c0_28, %c0_29], %71 {strides = array<i32>} : memref<16x32xf32, #tpu.memory_space<vmem>>, vector<16x32xf32>,
    } else {
    }
    %c2_i32 = arith.constant 2 : i32
    %13 = arith.cmpi sgt, %4, %c2_i32 : i32
    %14 = arith.extui %13 : i1 to i32
    %c0_i32_8 = arith.constant 0 : i32
    %15 = arith.cmpi ne, %14, %c0_i32_8 : i32
    scf.if %15 {
      %c0_22 = arith.constant 0 : index
      %c0_23 = arith.constant 0 : index
      %46 = vector.load %arg6[%c0_22, %c0_23] : memref<16x32xf32, #tpu.memory_space<vmem>>, vector<16x32xf32>
      %c32 = arith.constant 32 : index
      %c0_24 = arith.constant 0 : index
      %47 = vector.load %arg2[%c32, %c0_24] : memref<128x128xf32, #tpu.memory_space<vmem>>, vector<16x128xf32>
      %48 = arith.truncf %46 : vector<16x32xf32> to vector<16x32xbf16>
      %cst_25 = arith.constant dense<0.000000e+00> : vector<16x128xf32>
      %49 = tpu.matmul %48, %0, %cst_25 {dimension_numbers = #tpu.dot_dimension_numbers<[1], [0], [0], [1], [0, 0, 1, 1], [], []>} : vector<16x32xbf16>, vector<32x128xbf16>, vector<16x128xf32> -> vector<16x128xf32>
      %50 = arith.addf %47, %49 : vector<16x128xf32>
      %51 = vector.extract_strided_slice %50 {offsets = [0, 0], sizes = [16, 64], strides = [1, 1]} : vector<16x128xf32> to vector<16x64xf32>
      %52 = arith.negf %51 : vector<16x64xf32>
      %53 = math.exp %52 : vector<16x64xf32>
      %cst_26 = arith.constant 1.000000e+00 : f32
      %54 = vector.broadcast %cst_26 : f32 to vector<16x64xf32>
      %55 = arith.addf %54, %53 : vector<16x64xf32>
      %56 = arith.divf %54, %55 : vector<16x64xf32>
      %57 = vector.extract_strided_slice %56 {offsets = [0, 0], sizes = [16, 32], strides = [1, 1]} : vector<16x64xf32> to vector<16x32xf32>
      %58 = vector.extract_strided_slice %56 {offsets = [0, 32], sizes = [16, 32], strides = [1, 1]} : vector<16x64xf32> to vector<16x32xf32>
      %59 = vector.extract_strided_slice %47 {offsets = [0, 64], sizes = [16, 32], strides = [1, 1]} : vector<16x128xf32> to vector<16x32xf32>
      %60 = vector.extract_strided_slice %49 {offsets = [0, 64], sizes = [16, 32], strides = [1, 1]} : vector<16x128xf32> to vector<16x32xf32>
      %61 = arith.addf %60, %3 : vector<16x32xf32>
      %62 = arith.mulf %57, %61 : vector<16x32xf32>
      %63 = arith.addf %59, %62 : vector<16x32xf32>
      %64 = math.tanh %63 : vector<16x32xf32>
      %65 = arith.subf %46, %64 : vector<16x32xf32>
      %66 = arith.mulf %58, %65 : vector<16x32xf32>
      %67 = arith.addf %64, %66 : vector<16x32xf32>
      %68 = vector.extract_strided_slice %50 {offsets = [0, 96], sizes = [16, 32], strides = [1, 1]} : vector<16x128xf32> to vector<16x32xf32>
      %cst_27 = arith.constant 5.000000e-01 : f32
      %69 = vector.broadcast %cst_27 : f32 to vector<16x32xf32>
      %70 = arith.cmpf ogt, %68, %69 : vector<16x32xf32>
      %71 = arith.select %70, %67, %46 : vector<16x32xi1>, vector<16x32xf32>
      %c0_28 = arith.constant 0 : index
      %c0_29 = arith.constant 0 : index
      %72 = vector.load %arg6[%c0_28, %c0_29] : memref<16x32xf32, #tpu.memory_space<vmem>>, vector<16x32xf32>
      tpu.vector_store %arg6[%c0_28, %c0_29], %71 {strides = array<i32>} : memref<16x32xf32, #tpu.memory_space<vmem>>, vector<16x32xf32>,
    } else {
    }
    %c3_i32 = arith.constant 3 : i32
    %16 = arith.cmpi sgt, %4, %c3_i32 : i32
    %17 = arith.extui %16 : i1 to i32
    %c0_i32_9 = arith.constant 0 : i32
    %18 = arith.cmpi ne, %17, %c0_i32_9 : i32
    scf.if %18 {
      %c0_22 = arith.constant 0 : index
      %c0_23 = arith.constant 0 : index
      %46 = vector.load %arg6[%c0_22, %c0_23] : memref<16x32xf32, #tpu.memory_space<vmem>>, vector<16x32xf32>
      %c48 = arith.constant 48 : index
      %c0_24 = arith.constant 0 : index
      %47 = vector.load %arg2[%c48, %c0_24] : memref<128x128xf32, #tpu.memory_space<vmem>>, vector<16x128xf32>
      %48 = arith.truncf %46 : vector<16x32xf32> to vector<16x32xbf16>
      %cst_25 = arith.constant dense<0.000000e+00> : vector<16x128xf32>
      %49 = tpu.matmul %48, %0, %cst_25 {dimension_numbers = #tpu.dot_dimension_numbers<[1], [0], [0], [1], [0, 0, 1, 1], [], []>} : vector<16x32xbf16>, vector<32x128xbf16>, vector<16x128xf32> -> vector<16x128xf32>
      %50 = arith.addf %47, %49 : vector<16x128xf32>
      %51 = vector.extract_strided_slice %50 {offsets = [0, 0], sizes = [16, 64], strides = [1, 1]} : vector<16x128xf32> to vector<16x64xf32>
      %52 = arith.negf %51 : vector<16x64xf32>
      %53 = math.exp %52 : vector<16x64xf32>
      %cst_26 = arith.constant 1.000000e+00 : f32
      %54 = vector.broadcast %cst_26 : f32 to vector<16x64xf32>
      %55 = arith.addf %54, %53 : vector<16x64xf32>
      %56 = arith.divf %54, %55 : vector<16x64xf32>
      %57 = vector.extract_strided_slice %56 {offsets = [0, 0], sizes = [16, 32], strides = [1, 1]} : vector<16x64xf32> to vector<16x32xf32>
      %58 = vector.extract_strided_slice %56 {offsets = [0, 32], sizes = [16, 32], strides = [1, 1]} : vector<16x64xf32> to vector<16x32xf32>
      %59 = vector.extract_strided_slice %47 {offsets = [0, 64], sizes = [16, 32], strides = [1, 1]} : vector<16x128xf32> to vector<16x32xf32>
      %60 = vector.extract_strided_slice %49 {offsets = [0, 64], sizes = [16, 32], strides = [1, 1]} : vector<16x128xf32> to vector<16x32xf32>
      %61 = arith.addf %60, %3 : vector<16x32xf32>
      %62 = arith.mulf %57, %61 : vector<16x32xf32>
      %63 = arith.addf %59, %62 : vector<16x32xf32>
      %64 = math.tanh %63 : vector<16x32xf32>
      %65 = arith.subf %46, %64 : vector<16x32xf32>
      %66 = arith.mulf %58, %65 : vector<16x32xf32>
      %67 = arith.addf %64, %66 : vector<16x32xf32>
      %68 = vector.extract_strided_slice %50 {offsets = [0, 96], sizes = [16, 32], strides = [1, 1]} : vector<16x128xf32> to vector<16x32xf32>
      %cst_27 = arith.constant 5.000000e-01 : f32
      %69 = vector.broadcast %cst_27 : f32 to vector<16x32xf32>
      %70 = arith.cmpf ogt, %68, %69 : vector<16x32xf32>
      %71 = arith.select %70, %67, %46 : vector<16x32xi1>, vector<16x32xf32>
      %c0_28 = arith.constant 0 : index
      %c0_29 = arith.constant 0 : index
      %72 = vector.load %arg6[%c0_28, %c0_29] : memref<16x32xf32, #tpu.memory_space<vmem>>, vector<16x32xf32>
      tpu.vector_store %arg6[%c0_28, %c0_29], %71 {strides = array<i32>} : memref<16x32xf32, #tpu.memory_space<vmem>>, vector<16x32xf32>,
    } else {
    }
    %c4_i32 = arith.constant 4 : i32
    %19 = arith.cmpi sgt, %4, %c4_i32 : i32
    %20 = arith.extui %19 : i1 to i32
    %c0_i32_10 = arith.constant 0 : i32
    %21 = arith.cmpi ne, %20, %c0_i32_10 : i32
    scf.if %21 {
      %c0_22 = arith.constant 0 : index
      %c0_23 = arith.constant 0 : index
      %46 = vector.load %arg6[%c0_22, %c0_23] : memref<16x32xf32, #tpu.memory_space<vmem>>, vector<16x32xf32>
      %c64 = arith.constant 64 : index
      %c0_24 = arith.constant 0 : index
      %47 = vector.load %arg2[%c64, %c0_24] : memref<128x128xf32, #tpu.memory_space<vmem>>, vector<16x128xf32>
      %48 = arith.truncf %46 : vector<16x32xf32> to vector<16x32xbf16>
      %cst_25 = arith.constant dense<0.000000e+00> : vector<16x128xf32>
      %49 = tpu.matmul %48, %0, %cst_25 {dimension_numbers = #tpu.dot_dimension_numbers<[1], [0], [0], [1], [0, 0, 1, 1], [], []>} : vector<16x32xbf16>, vector<32x128xbf16>, vector<16x128xf32> -> vector<16x128xf32>
      %50 = arith.addf %47, %49 : vector<16x128xf32>
      %51 = vector.extract_strided_slice %50 {offsets = [0, 0], sizes = [16, 64], strides = [1, 1]} : vector<16x128xf32> to vector<16x64xf32>
      %52 = arith.negf %51 : vector<16x64xf32>
      %53 = math.exp %52 : vector<16x64xf32>
      %cst_26 = arith.constant 1.000000e+00 : f32
      %54 = vector.broadcast %cst_26 : f32 to vector<16x64xf32>
      %55 = arith.addf %54, %53 : vector<16x64xf32>
      %56 = arith.divf %54, %55 : vector<16x64xf32>
      %57 = vector.extract_strided_slice %56 {offsets = [0, 0], sizes = [16, 32], strides = [1, 1]} : vector<16x64xf32> to vector<16x32xf32>
      %58 = vector.extract_strided_slice %56 {offsets = [0, 32], sizes = [16, 32], strides = [1, 1]} : vector<16x64xf32> to vector<16x32xf32>
      %59 = vector.extract_strided_slice %47 {offsets = [0, 64], sizes = [16, 32], strides = [1, 1]} : vector<16x128xf32> to vector<16x32xf32>
      %60 = vector.extract_strided_slice %49 {offsets = [0, 64], sizes = [16, 32], strides = [1, 1]} : vector<16x128xf32> to vector<16x32xf32>
      %61 = arith.addf %60, %3 : vector<16x32xf32>
      %62 = arith.mulf %57, %61 : vector<16x32xf32>
      %63 = arith.addf %59, %62 : vector<16x32xf32>
      %64 = math.tanh %63 : vector<16x32xf32>
      %65 = arith.subf %46, %64 : vector<16x32xf32>
      %66 = arith.mulf %58, %65 : vector<16x32xf32>
      %67 = arith.addf %64, %66 : vector<16x32xf32>
      %68 = vector.extract_strided_slice %50 {offsets = [0, 96], sizes = [16, 32], strides = [1, 1]} : vector<16x128xf32> to vector<16x32xf32>
      %cst_27 = arith.constant 5.000000e-01 : f32
      %69 = vector.broadcast %cst_27 : f32 to vector<16x32xf32>
      %70 = arith.cmpf ogt, %68, %69 : vector<16x32xf32>
      %71 = arith.select %70, %67, %46 : vector<16x32xi1>, vector<16x32xf32>
      %c0_28 = arith.constant 0 : index
      %c0_29 = arith.constant 0 : index
      %72 = vector.load %arg6[%c0_28, %c0_29] : memref<16x32xf32, #tpu.memory_space<vmem>>, vector<16x32xf32>
      tpu.vector_store %arg6[%c0_28, %c0_29], %71 {strides = array<i32>} : memref<16x32xf32, #tpu.memory_space<vmem>>, vector<16x32xf32>,
    } else {
    }
    %c5_i32 = arith.constant 5 : i32
    %22 = arith.cmpi sgt, %4, %c5_i32 : i32
    %23 = arith.extui %22 : i1 to i32
    %c0_i32_11 = arith.constant 0 : i32
    %24 = arith.cmpi ne, %23, %c0_i32_11 : i32
    scf.if %24 {
      %c0_22 = arith.constant 0 : index
      %c0_23 = arith.constant 0 : index
      %46 = vector.load %arg6[%c0_22, %c0_23] : memref<16x32xf32, #tpu.memory_space<vmem>>, vector<16x32xf32>
      %c80 = arith.constant 80 : index
      %c0_24 = arith.constant 0 : index
      %47 = vector.load %arg2[%c80, %c0_24] : memref<128x128xf32, #tpu.memory_space<vmem>>, vector<16x128xf32>
      %48 = arith.truncf %46 : vector<16x32xf32> to vector<16x32xbf16>
      %cst_25 = arith.constant dense<0.000000e+00> : vector<16x128xf32>
      %49 = tpu.matmul %48, %0, %cst_25 {dimension_numbers = #tpu.dot_dimension_numbers<[1], [0], [0], [1], [0, 0, 1, 1], [], []>} : vector<16x32xbf16>, vector<32x128xbf16>, vector<16x128xf32> -> vector<16x128xf32>
      %50 = arith.addf %47, %49 : vector<16x128xf32>
      %51 = vector.extract_strided_slice %50 {offsets = [0, 0], sizes = [16, 64], strides = [1, 1]} : vector<16x128xf32> to vector<16x64xf32>
      %52 = arith.negf %51 : vector<16x64xf32>
      %53 = math.exp %52 : vector<16x64xf32>
      %cst_26 = arith.constant 1.000000e+00 : f32
      %54 = vector.broadcast %cst_26 : f32 to vector<16x64xf32>
      %55 = arith.addf %54, %53 : vector<16x64xf32>
      %56 = arith.divf %54, %55 : vector<16x64xf32>
      %57 = vector.extract_strided_slice %56 {offsets = [0, 0], sizes = [16, 32], strides = [1, 1]} : vector<16x64xf32> to vector<16x32xf32>
      %58 = vector.extract_strided_slice %56 {offsets = [0, 32], sizes = [16, 32], strides = [1, 1]} : vector<16x64xf32> to vector<16x32xf32>
      %59 = vector.extract_strided_slice %47 {offsets = [0, 64], sizes = [16, 32], strides = [1, 1]} : vector<16x128xf32> to vector<16x32xf32>
      %60 = vector.extract_strided_slice %49 {offsets = [0, 64], sizes = [16, 32], strides = [1, 1]} : vector<16x128xf32> to vector<16x32xf32>
      %61 = arith.addf %60, %3 : vector<16x32xf32>
      %62 = arith.mulf %57, %61 : vector<16x32xf32>
      %63 = arith.addf %59, %62 : vector<16x32xf32>
      %64 = math.tanh %63 : vector<16x32xf32>
      %65 = arith.subf %46, %64 : vector<16x32xf32>
      %66 = arith.mulf %58, %65 : vector<16x32xf32>
      %67 = arith.addf %64, %66 : vector<16x32xf32>
      %68 = vector.extract_strided_slice %50 {offsets = [0, 96], sizes = [16, 32], strides = [1, 1]} : vector<16x128xf32> to vector<16x32xf32>
      %cst_27 = arith.constant 5.000000e-01 : f32
      %69 = vector.broadcast %cst_27 : f32 to vector<16x32xf32>
      %70 = arith.cmpf ogt, %68, %69 : vector<16x32xf32>
      %71 = arith.select %70, %67, %46 : vector<16x32xi1>, vector<16x32xf32>
      %c0_28 = arith.constant 0 : index
      %c0_29 = arith.constant 0 : index
      %72 = vector.load %arg6[%c0_28, %c0_29] : memref<16x32xf32, #tpu.memory_space<vmem>>, vector<16x32xf32>
      tpu.vector_store %arg6[%c0_28, %c0_29], %71 {strides = array<i32>} : memref<16x32xf32, #tpu.memory_space<vmem>>, vector<16x32xf32>,
    } else {
    }
    %c6_i32 = arith.constant 6 : i32
    %25 = arith.cmpi sgt, %4, %c6_i32 : i32
    %26 = arith.extui %25 : i1 to i32
    %c0_i32_12 = arith.constant 0 : i32
    %27 = arith.cmpi ne, %26, %c0_i32_12 : i32
    scf.if %27 {
      %c0_22 = arith.constant 0 : index
      %c0_23 = arith.constant 0 : index
      %46 = vector.load %arg6[%c0_22, %c0_23] : memref<16x32xf32, #tpu.memory_space<vmem>>, vector<16x32xf32>
      %c96 = arith.constant 96 : index
      %c0_24 = arith.constant 0 : index
      %47 = vector.load %arg2[%c96, %c0_24] : memref<128x128xf32, #tpu.memory_space<vmem>>, vector<16x128xf32>
      %48 = arith.truncf %46 : vector<16x32xf32> to vector<16x32xbf16>
      %cst_25 = arith.constant dense<0.000000e+00> : vector<16x128xf32>
      %49 = tpu.matmul %48, %0, %cst_25 {dimension_numbers = #tpu.dot_dimension_numbers<[1], [0], [0], [1], [0, 0, 1, 1], [], []>} : vector<16x32xbf16>, vector<32x128xbf16>, vector<16x128xf32> -> vector<16x128xf32>
      %50 = arith.addf %47, %49 : vector<16x128xf32>
      %51 = vector.extract_strided_slice %50 {offsets = [0, 0], sizes = [16, 64], strides = [1, 1]} : vector<16x128xf32> to vector<16x64xf32>
      %52 = arith.negf %51 : vector<16x64xf32>
      %53 = math.exp %52 : vector<16x64xf32>
      %cst_26 = arith.constant 1.000000e+00 : f32
      %54 = vector.broadcast %cst_26 : f32 to vector<16x64xf32>
      %55 = arith.addf %54, %53 : vector<16x64xf32>
      %56 = arith.divf %54, %55 : vector<16x64xf32>
      %57 = vector.extract_strided_slice %56 {offsets = [0, 0], sizes = [16, 32], strides = [1, 1]} : vector<16x64xf32> to vector<16x32xf32>
      %58 = vector.extract_strided_slice %56 {offsets = [0, 32], sizes = [16, 32], strides = [1, 1]} : vector<16x64xf32> to vector<16x32xf32>
      %59 = vector.extract_strided_slice %47 {offsets = [0, 64], sizes = [16, 32], strides = [1, 1]} : vector<16x128xf32> to vector<16x32xf32>
      %60 = vector.extract_strided_slice %49 {offsets = [0, 64], sizes = [16, 32], strides = [1, 1]} : vector<16x128xf32> to vector<16x32xf32>
      %61 = arith.addf %60, %3 : vector<16x32xf32>
      %62 = arith.mulf %57, %61 : vector<16x32xf32>
      %63 = arith.addf %59, %62 : vector<16x32xf32>
      %64 = math.tanh %63 : vector<16x32xf32>
      %65 = arith.subf %46, %64 : vector<16x32xf32>
      %66 = arith.mulf %58, %65 : vector<16x32xf32>
      %67 = arith.addf %64, %66 : vector<16x32xf32>
      %68 = vector.extract_strided_slice %50 {offsets = [0, 96], sizes = [16, 32], strides = [1, 1]} : vector<16x128xf32> to vector<16x32xf32>
      %cst_27 = arith.constant 5.000000e-01 : f32
      %69 = vector.broadcast %cst_27 : f32 to vector<16x32xf32>
      %70 = arith.cmpf ogt, %68, %69 : vector<16x32xf32>
      %71 = arith.select %70, %67, %46 : vector<16x32xi1>, vector<16x32xf32>
      %c0_28 = arith.constant 0 : index
      %c0_29 = arith.constant 0 : index
      %72 = vector.load %arg6[%c0_28, %c0_29] : memref<16x32xf32, #tpu.memory_space<vmem>>, vector<16x32xf32>
      tpu.vector_store %arg6[%c0_28, %c0_29], %71 {strides = array<i32>} : memref<16x32xf32, #tpu.memory_space<vmem>>, vector<16x32xf32>,
    } else {
    }
    %c7_i32 = arith.constant 7 : i32
    %28 = arith.cmpi sgt, %4, %c7_i32 : i32
    %29 = arith.extui %28 : i1 to i32
    %c0_i32_13 = arith.constant 0 : i32
    %30 = arith.cmpi ne, %29, %c0_i32_13 : i32
    scf.if %30 {
      %c0_22 = arith.constant 0 : index
      %c0_23 = arith.constant 0 : index
      %46 = vector.load %arg6[%c0_22, %c0_23] : memref<16x32xf32, #tpu.memory_space<vmem>>, vector<16x32xf32>
      %c112 = arith.constant 112 : index
      %c0_24 = arith.constant 0 : index
      %47 = vector.load %arg2[%c112, %c0_24] : memref<128x128xf32, #tpu.memory_space<vmem>>, vector<16x128xf32>
      %48 = arith.truncf %46 : vector<16x32xf32> to vector<16x32xbf16>
      %cst_25 = arith.constant dense<0.000000e+00> : vector<16x128xf32>
      %49 = tpu.matmul %48, %0, %cst_25 {dimension_numbers = #tpu.dot_dimension_numbers<[1], [0], [0], [1], [0, 0, 1, 1], [], []>} : vector<16x32xbf16>, vector<32x128xbf16>, vector<16x128xf32> -> vector<16x128xf32>
      %50 = arith.addf %47, %49 : vector<16x128xf32>
      %51 = vector.extract_strided_slice %50 {offsets = [0, 0], sizes = [16, 64], strides = [1, 1]} : vector<16x128xf32> to vector<16x64xf32>
      %52 = arith.negf %51 : vector<16x64xf32>
      %53 = math.exp %52 : vector<16x64xf32>
      %cst_26 = arith.constant 1.000000e+00 : f32
      %54 = vector.broadcast %cst_26 : f32 to vector<16x64xf32>
      %55 = arith.addf %54, %53 : vector<16x64xf32>
      %56 = arith.divf %54, %55 : vector<16x64xf32>
      %57 = vector.extract_strided_slice %56 {offsets = [0, 0], sizes = [16, 32], strides = [1, 1]} : vector<16x64xf32> to vector<16x32xf32>
      %58 = vector.extract_strided_slice %56 {offsets = [0, 32], sizes = [16, 32], strides = [1, 1]} : vector<16x64xf32> to vector<16x32xf32>
      %59 = vector.extract_strided_slice %47 {offsets = [0, 64], sizes = [16, 32], strides = [1, 1]} : vector<16x128xf32> to vector<16x32xf32>
      %60 = vector.extract_strided_slice %49 {offsets = [0, 64], sizes = [16, 32], strides = [1, 1]} : vector<16x128xf32> to vector<16x32xf32>
      %61 = arith.addf %60, %3 : vector<16x32xf32>
      %62 = arith.mulf %57, %61 : vector<16x32xf32>
      %63 = arith.addf %59, %62 : vector<16x32xf32>
      %64 = math.tanh %63 : vector<16x32xf32>
      %65 = arith.subf %46, %64 : vector<16x32xf32>
      %66 = arith.mulf %58, %65 : vector<16x32xf32>
      %67 = arith.addf %64, %66 : vector<16x32xf32>
      %68 = vector.extract_strided_slice %50 {offsets = [0, 96], sizes = [16, 32], strides = [1, 1]} : vector<16x128xf32> to vector<16x32xf32>
      %cst_27 = arith.constant 5.000000e-01 : f32
      %69 = vector.broadcast %cst_27 : f32 to vector<16x32xf32>
      %70 = arith.cmpf ogt, %68, %69 : vector<16x32xf32>
      %71 = arith.select %70, %67, %46 : vector<16x32xi1>, vector<16x32xf32>
      %c0_28 = arith.constant 0 : index
      %c0_29 = arith.constant 0 : index
      %72 = vector.load %arg6[%c0_28, %c0_29] : memref<16x32xf32, #tpu.memory_space<vmem>>, vector<16x32xf32>
      tpu.vector_store %arg6[%c0_28, %c0_29], %71 {strides = array<i32>} : memref<16x32xf32, #tpu.memory_space<vmem>>, vector<16x32xf32>,
    } else {
    }
    %c0_14 = arith.constant 0 : index
    %c0_15 = arith.constant 0 : index
    %31 = vector.load %arg6[%c0_14, %c0_15] : memref<16x32xf32, #tpu.memory_space<vmem>>, vector<16x32xf32>
    %c1 = arith.constant 1 : index
    %c0_16 = arith.constant 0 : index
    %32 = vector.load %arg4[%c1, %c0_16] : memref<3x32xf32, #tpu.memory_space<vmem>>, vector<1x32xf32>
    %c2 = arith.constant 2 : index
    %c0_17 = arith.constant 0 : index
    %33 = vector.load %arg4[%c2, %c0_17] : memref<3x32xf32, #tpu.memory_space<vmem>>, vector<1x1xf32>
    %34 = vector.broadcast %32 : vector<1x32xf32> to vector<16x32xf32>
    %35 = arith.mulf %31, %34 : vector<16x32xf32>
    %cst_18 = arith.constant dense<0.000000e+00> : vector<16xf32>
    %36 = vector.multi_reduction <add>, %35, %cst_18 [1] : vector<16x32xf32> to vector<16xf32>
    %37 = vector.shape_cast %36 : vector<16xf32> to vector<16x1xf32>
    %38 = vector.broadcast %33 : vector<1x1xf32> to vector<16x1xf32>
    %39 = arith.addf %37, %38 : vector<16x1xf32>
    %40 = arith.negf %39 : vector<16x1xf32>
    %41 = math.exp %40 : vector<16x1xf32>
    %cst_19 = arith.constant 1.000000e+00 : f32
    %42 = vector.broadcast %cst_19 : f32 to vector<16x1xf32>
    %43 = arith.addf %42, %41 : vector<16x1xf32>
    %44 = arith.divf %42, %43 : vector<16x1xf32>
    %c0_20 = arith.constant 0 : index
    %c0_21 = arith.constant 0 : index
    %45 = vector.load %arg5[%c0_20, %c0_21] : memref<16x1xf32, #tpu.memory_space<vmem>>, vector<16x1xf32>
    tpu.vector_store %arg5[%c0_20, %c0_21], %44 {strides = array<i32>} : memref<16x1xf32, #tpu.memory_space<vmem>>, vector<16x1xf32>,
    return
  }
  func.func @transform_0(%arg0: i32, %arg1: memref<1xi32, #tpu.memory_space<smem>>) -> (i32, i32) {
    %c0_i32 = arith.constant 0 : i32
    %c0_i32_0 = arith.constant 0 : i32
    %c0_i32_1 = arith.constant 0 : i32
    return %c0_i32, %c0_i32_0 : i32, i32
  }
  func.func @transform_1(%arg0: i32, %arg1: memref<1xi32, #tpu.memory_space<smem>>) -> (i32, i32) {
    %c0_i32 = arith.constant 0 : i32
    %c0_i32_0 = arith.constant 0 : i32
    %c0_i32_1 = arith.constant 0 : i32
    return %c0_i32, %c0_i32_0 : i32, i32
  }
  func.func @transform_2(%arg0: i32, %arg1: memref<1xi32, #tpu.memory_space<smem>>) -> (i32, i32) {
    %c0_i32 = arith.constant 0 : i32
    %c0_i32_0 = arith.constant 0 : i32
    %c0_i32_1 = arith.constant 0 : i32
    return %c0_i32, %c0_i32_0 : i32, i32
  }
  func.func @transform_3(%arg0: i32, %arg1: memref<1xi32, #tpu.memory_space<smem>>) -> (i32, i32) {
    %c0_i32 = arith.constant 0 : i32
    %c0_i32_0 = arith.constant 0 : i32
    %c0_i32_1 = arith.constant 0 : i32
    return %c0_i32, %c0_i32_0 : i32, i32
  }
}

</mosaic_0001>

<bundles_post_ra>
// kernel: model_forward.1
= control target key start
LH: loop header
LB: loop body
LE: loop exit
PB: predicated region body
PF: predicated region fallthrough
CT: control target
= control target key end

     0   :  { %vm27_vm0 = vcmask 261120   ;;  %v1693_v3 = vmov 0.0   ;;  %s2072_s0 = inlined_call_operand.<no memory space> [shape: s32[1], index: 0, kind: input, shape index: {}]   ;;  %s2073_s1 = inlined_call_operand.vmem [shape: f32[128,128], index: 1, kind: input, shape index: {}]   ;;  %s2074_s2 = inlined_call_operand.vmem [shape: bf16[32,128], index: 2, kind: input, shape index: {}]   ;;  %s2075_s3 = inlined_call_operand.vmem [shape: f32[3,32], index: 3, kind: input, shape index: {}]   ;;  %s2076_s4 = inlined_call_operand.vmem [shape: f32[16,1], index: 4, kind: output, shape index: {}]  }
   0x1   :  { %v1762_v0 = vld [vmem:[%s2074_s2] sm:$0xf]  ;;  %v1767_v1 = vld [vmem:[%s2074_s2 + $0x4] sm:$0xf]  ;;  %v1772_v2 = vld [vmem:[%s2074_s2 + $0x8] sm:$0xf] }
   0x2   :  { %28 = vst.msk [vmem:[#allocation2] sm:$0xff] %vm27_vm0, %v1693_v3  ;;  %29 = vst.msk [vmem:[#allocation2 + $0x8] sm:$0xff] %vm27_vm0, %v1693_v3  ;;  %v1779_v4 = vld [vmem:[%s2074_s2 + $0xc] sm:$0xf]  ;;  %v1784_v5 = vld [vmem:[%s2075_s3] ss:$0 sm:$0xff] }
   0x3   :  { %p1408_p0 = scmp.le.s32.totalorder %s2072_s0, 0 }
   0x4   :  { %s1696_s2 = smov (!%p1408_p0), 64   ;;  %s1697_s5 = smov (!%p1408_p0), 32  }
   0x5   :  { %33 = sbr.rel (%p1408_p0) target bundleno = 1053 (0x41d), region = 17  ;;  %s1698_s6 = smov (!%p1408_p0), 96  }
   0xa   :  { %v1410_v6 = vcombine.low %v1772_v2, %v1779_v4  ;;  %v1694_v7 = vmov 0.0   ;;  %vm1695_vm1 = vmmov 0   ;;  %v1409_v8 = vcombine.low %v1762_v0, %v1767_v1  ;;  %v1793_v9 = vld [vmem:[#allocation2] sm:$0xff]  ;;  %v1795_v10 = vld [vmem:[#allocation2 + $0x8] sm:$0xff]  ;;  %110 = vrot.lane.b32.xlu0 %v1784_v5, %s1696_s2 }
   0xb   :  { %1484 = vmatprep.subr.bf16.mxu0 %v1694_v7  ;;  %1488 = vmatprep.mubr.msk.bf16.mxu0 %vm1695_vm1, %v1694_v7  ;;  %v38_v11 = vpack.c.bf16 %v1795_v10, %v1793_v9  ;;  %v36_v19 = vld [vmem:[%s2073_s1] sm:$0xff]  ;;  %v37_v21 = vld [vmem:[%s2073_s1 + $0x8] sm:$0xff] }
   0xc   :  { %1485 = vmatpush3.bf16.msra.mxu0 %v1410_v6 }
   0xd   :  { %1486 = vmatprep.subr.bf16.mxu0 %v1694_v7 }
  0x10   :  { %1487 = vmatpush3.bf16.msra.mxu0 %v1409_v8 }
  0x13   :  { %1489 = vmatmul.mubr.msk.bf16.vlgmr.msra.gmra.mxu0 %vm27_vm0, %v38_v11 }
  0x7c   :  { %v111_v12 = vpop.permute.xlu0 %110 }
  0xd3   :  { %v88_v13 = vpop.f32.mrf.mxu0 }
  0xd4   :  { %v113_v14 = vadd.f32 %v111_v12, %v88_v13  ;;  %v95_v20 = vadd.f32 %v88_v13, %v36_v19 }
  0xd5   :  { %v1490_v15 = vpop.f32.mrf.mxu0 }
  0xd6   :  { %117 = vrot.lane.b32.xlu0 %v113_v14, %s1696_s2  ;;  %v1412_v22 = vmul.f32 -1.442695, %v95_v20  ;;  %vm167_vm2 = vcmp.gt.f32.partialorder %v95_v20, 0.5 }
  0xd7   :  { %v91_v16 = vpop.f32.mrf.mxu0 }
  0xd8   :  { %v114_v17 = vadd.f32 %v111_v12, %v91_v16  ;;  %v96_v23 = vadd.f32 %v91_v16, %v37_v21  ;;  %1589 = vpow2.f32 %v1412_v22 }
  0xd9   :  { %v1491_v18 = vpop.f32.mrf.mxu0 }
  0xda   :  { %119 = vrot.lane.b32.xlu1 %v114_v17, %s1696_s2  ;;  %v1413_v24 = vmul.f32 -1.442695, %v96_v23  ;;  %vm168_vm3 = vcmp.gt.f32.partialorder %v96_v23, 0.5 }
  0xdc   :  { %1591 = vpow2.f32 %v1413_v24 }
  0xe5   :  { %v1590_v25 = vpop.eup %1589 }
  0xe6   :  { %v103_v26 = vadd.f32 1.0, %v1590_v25 }
  0xe8   :  { %1593 = vrcp.f32 %v103_v26 }
  0xe9   :  { %v1592_v27 = vpop.eup %1591 }
  0xea   :  { %v104_v28 = vadd.f32 1.0, %v1592_v27 }
  0xec   :  { %1595 = vrcp.f32 %v104_v28 }
  0xf5   :  { %v1594_v29 = vpop.eup %1593 }
  0xf9   :  { %v1596_v32 = vpop.eup %1595 }
 0x148   :  { %v118_v30 = vpop.permute.xlu0 %117 }
 0x149   :  { %v123_v31 = vmul.f32 %v1594_v29, %v118_v30 }
 0x14b   :  { %127 = vrot.lane.b32.xlu1 %v123_v31, %s1696_s2 }
 0x14c   :  { %v120_v33 = vpop.permute.xlu1 %119 }
 0x14d   :  { %v124_v34 = vmul.f32 %v1596_v32, %v120_v33 }
 0x14f   :  { %129 = vrot.lane.b32.xlu0 %v124_v34, %s1696_s2 }
 0x1bd   :  { %v128_v35 = vpop.permute.xlu1 %127 }
 0x1be   :  { %v133_v36 = vadd.f32 %v128_v35, %v36_v19 }
 0x1c0   :  { %1597 = vtanh.f32 %v133_v36 }
 0x1c1   :  { %v130_v37 = vpop.permute.xlu0 %129 }
 0x1c2   :  { %v134_v38 = vadd.f32 %v130_v37, %v37_v21 }
 0x1c4   :  { %1599 = vtanh.f32 %v134_v38 }
 0x1cd   :  { %v1598_v39 = vpop.eup %1597 }
 0x1ce   :  { %139 = vrot.lane.b32.xlu1 %v1598_v39, %s1696_s2 }
 0x1d1   :  { %v1600_v40 = vpop.eup %1599 }
 0x1d2   :  { %141 = vrot.lane.b32.xlu0 %v1600_v40, %s1696_s2 }
 0x240   :  { %v140_v41 = vpop.permute.xlu1 %139 }
 0x241   :  { %v145_v42 = vsub.f32 %v1793_v9, %v140_v41 }
 0x243   :  { %149 = vrot.lane.b32.xlu1 %v145_v42, %s1697_s5 }
 0x244   :  { %v142_v43 = vpop.permute.xlu0 %141 }
 0x245   :  { %v146_v44 = vsub.f32 %v1795_v10, %v142_v43 }
 0x247   :  { %151 = vrot.lane.b32.xlu0 %v146_v44, %s1697_s5 }
 0x2b5   :  { %v150_v45 = vpop.permute.xlu1 %149 }
 0x2b6   :  { %v155_v46 = vmul.f32 %v1594_v29, %v150_v45 }
 0x2b8   :  { %159 = vrot.lane.b32.xlu1 %v155_v46, %s1697_s5 }
 0x2b9   :  { %v152_v47 = vpop.permute.xlu0 %151 }
 0x2ba   :  { %v156_v48 = vmul.f32 %v1596_v32, %v152_v47 }
 0x2bc   :  { %161 = vrot.lane.b32.xlu0 %v156_v48, %s1697_s5 }
 0x32a   :  { %v160_v49 = vpop.permute.xlu1 %159 }
 0x32b   :  { %v165_v50 = vadd.f32 %v1598_v39, %v160_v49 }
 0x32d   :  { %171 = vrot.lane.b32.xlu1 %v165_v50, %s1697_s5 }
 0x32e   :  { %v162_v51 = vpop.permute.xlu0 %161 }
 0x32f   :  { %v166_v52 = vadd.f32 %v1600_v40, %v162_v51 }
 0x331   :  { %179 = vrot.lane.b32.xlu1 %v1793_v9, %s1698_s6  ;;  %173 = vrot.lane.b32.xlu0 %v166_v52, %s1697_s5 }
 0x335   :  { %181 = vrot.lane.b32.xlu0 %v1795_v10, %s1698_s6 }
 0x39f   :  { %v172_v53 = vpop.permute.xlu1 %171 }
 0x3a3   :  { %v180_v54 = vpop.permute.xlu1 %179  ;;  %v174_v55 = vpop.permute.xlu0 %173 }
 0x3a4   :  { %v185_v56 = vsel %vm167_vm2, %v172_v53, %v180_v54 }
 0x3a5   :  { %189 = vrot.lane.b32.xlu1 %v185_v56, %s1697_s5 }
 0x3a7   :  { %v182_v57 = vpop.permute.xlu0 %181 }
 0x3a8   :  { %v186_v58 = vsel %vm168_vm3, %v174_v55, %v182_v57 }
 0x3a9   :  { %191 = vrot.lane.b32.xlu0 %v186_v58, %s1697_s5 }
 0x417   :  { %v190_v59 = vpop.permute.xlu1 %189 }
 0x418   :  { %195 = vst.msk [vmem:[#allocation2] sm:$0xff] %vm27_vm0, %v190_v59 }
 0x41b   :  { %v192_v60 = vpop.permute.xlu0 %191 }
 0x41c   :  { %196 = vst.msk [vmem:[#allocation2 + $0x8] sm:$0xff] %vm27_vm0, %v192_v60 }
 0x41d PF:  { %p1414_p1 = scmp.le.s32.totalorder %s2072_s0, 1 }
 0x41e   :  { %s1701_s9 = smov (!%p1414_p1), 64   ;;  %s1702_s14 = smov (!%p1414_p1), 32  }
 0x41f   :  { %200 = sbr.rel (%p1414_p1) target bundleno = 2103 (0x837), region = 21  ;;  %s1703_s15 = smov (!%p1414_p1), 96  }
 0x424   :  { %v1416_v61 = vcombine.low %v1772_v2, %v1779_v4  ;;  %v1699_v62 = vmov 0.0   ;;  %vm1700_vm4 = vmmov 0   ;;  %v1415_v63 = vcombine.low %v1762_v0, %v1767_v1  ;;  %v1827_v3 = vld [vmem:[#allocation2] sm:$0xff]  ;;  %v1829_v6 = vld [vmem:[#allocation2 + $0x8] sm:$0xff]  ;;  %277 = vrot.lane.b32.xlu0 %v1784_v5, %s1701_s9  ;;  %v203_v15 = vld [vmem:[%s2073_s1 + $0x10] sm:$0xff] }
 0x425   :  { %1492 = vmatprep.subr.bf16.mxu0 %v1699_v62  ;;  %1496 = vmatprep.mubr.msk.bf16.mxu0 %vm1700_vm4, %v1699_v62  ;;  %v205_v7 = vpack.c.bf16 %v1829_v6, %v1827_v3  ;;  %v204_v17 = vld [vmem:[%s2073_s1 + $0x18] sm:$0xff] }
 0x426   :  { %1493 = vmatpush3.bf16.msra.mxu0 %v1416_v61 }
 0x427   :  { %1494 = vmatprep.subr.bf16.mxu0 %v1699_v62 }
 0x42a   :  { %1495 = vmatpush3.bf16.msra.mxu0 %v1415_v63 }
 0x42d   :  { %1497 = vmatmul.mubr.msk.bf16.vlgmr.msra.gmra.mxu0 %vm27_vm0, %v205_v7 }
 0x496   :  { %v278_v8 = vpop.permute.xlu0 %277 }
 0x4ed   :  { %v255_v9 = vpop.f32.mrf.mxu0 }
 0x4ee   :  { %v280_v10 = vadd.f32 %v278_v8, %v255_v9  ;;  %v262_v16 = vadd.f32 %v255_v9, %v203_v15 }
 0x4ef   :  { %v1498_v11 = vpop.f32.mrf.mxu0 }
 0x4f0   :  { %284 = vrot.lane.b32.xlu0 %v280_v10, %s1701_s9  ;;  %v1418_v18 = vmul.f32 -1.442695, %v262_v16  ;;  %vm334_vm5 = vcmp.gt.f32.partialorder %v262_v16, 0.5 }
 0x4f1   :  { %v258_v12 = vpop.f32.mrf.mxu0 }
 0x4f2   :  { %v281_v13 = vadd.f32 %v278_v8, %v258_v12  ;;  %v263_v19 = vadd.f32 %v258_v12, %v204_v17  ;;  %1601 = vpow2.f32 %v1418_v18 }
 0x4f3   :  { %v1499_v14 = vpop.f32.mrf.mxu0 }
 0x4f4   :  { %286 = vrot.lane.b32.xlu1 %v281_v13, %s1701_s9  ;;  %v1419_v20 = vmul.f32 -1.442695, %v263_v19  ;;  %vm335_vm6 = vcmp.gt.f32.partialorder %v263_v19, 0.5 }
 0x4f6   :  { %1603 = vpow2.f32 %v1419_v20 }
 0x4ff   :  { %v1602_v21 = vpop.eup %1601 }
 0x500   :  { %v270_v22 = vadd.f32 1.0, %v1602_v21 }
 0x502   :  { %1605 = vrcp.f32 %v270_v22 }
 0x503   :  { %v1604_v23 = vpop.eup %1603 }
 0x504   :  { %v271_v24 = vadd.f32 1.0, %v1604_v23 }
 0x506   :  { %1607 = vrcp.f32 %v271_v24 }
 0x50f   :  { %v1606_v25 = vpop.eup %1605 }
 0x513   :  { %v1608_v28 = vpop.eup %1607 }
 0x562   :  { %v285_v26 = vpop.permute.xlu0 %284 }
 0x563   :  { %v290_v27 = vmul.f32 %v1606_v25, %v285_v26 }
 0x565   :  { %294 = vrot.lane.b32.xlu1 %v290_v27, %s1701_s9 }
 0x566   :  { %v287_v29 = vpop.permute.xlu1 %286 }
 0x567   :  { %v291_v30 = vmul.f32 %v1608_v28, %v287_v29 }
 0x569   :  { %296 = vrot.lane.b32.xlu0 %v291_v30, %s1701_s9 }
 0x5d7   :  { %v295_v31 = vpop.permute.xlu1 %294 }
 0x5d8   :  { %v300_v32 = vadd.f32 %v295_v31, %v203_v15 }
 0x5da   :  { %1609 = vtanh.f32 %v300_v32 }
 0x5db   :  { %v297_v33 = vpop.permute.xlu0 %296 }
 0x5dc   :  { %v301_v34 = vadd.f32 %v297_v33, %v204_v17 }
 0x5de   :  { %1611 = vtanh.f32 %v301_v34 }
 0x5e7   :  { %v1610_v35 = vpop.eup %1609 }
 0x5e8   :  { %306 = vrot.lane.b32.xlu1 %v1610_v35, %s1701_s9 }
 0x5eb   :  { %v1612_v36 = vpop.eup %1611 }
 0x5ec   :  { %308 = vrot.lane.b32.xlu0 %v1612_v36, %s1701_s9 }
 0x65a   :  { %v307_v37 = vpop.permute.xlu1 %306 }
 0x65b   :  { %v312_v38 = vsub.f32 %v1827_v3, %v307_v37 }
 0x65d   :  { %316 = vrot.lane.b32.xlu1 %v312_v38, %s1702_s14 }
 0x65e   :  { %v309_v39 = vpop.permute.xlu0 %308 }
 0x65f   :  { %v313_v40 = vsub.f32 %v1829_v6, %v309_v39 }
 0x661   :  { %318 = vrot.lane.b32.xlu0 %v313_v40, %s1702_s14 }
 0x6cf   :  { %v317_v41 = vpop.permute.xlu1 %316 }
 0x6d0   :  { %v322_v42 = vmul.f32 %v1606_v25, %v317_v41 }
 0x6d2   :  { %326 = vrot.lane.b32.xlu1 %v322_v42, %s1702_s14 }
 0x6d3   :  { %v319_v43 = vpop.permute.xlu0 %318 }
 0x6d4   :  { %v323_v44 = vmul.f32 %v1608_v28, %v319_v43 }
 0x6d6   :  { %328 = vrot.lane.b32.xlu0 %v323_v44, %s1702_s14 }
 0x744   :  { %v327_v45 = vpop.permute.xlu1 %326 }
 0x745   :  { %v332_v46 = vadd.f32 %v1610_v35, %v327_v45 }
 0x747   :  { %338 = vrot.lane.b32.xlu1 %v332_v46, %s1702_s14 }
 0x748   :  { %v329_v47 = vpop.permute.xlu0 %328 }
 0x749   :  { %v333_v48 = vadd.f32 %v1612_v36, %v329_v47 }
 0x74b   :  { %346 = vrot.lane.b32.xlu1 %v1827_v3, %s1703_s15  ;;  %340 = vrot.lane.b32.xlu0 %v333_v48, %s1702_s14 }
 0x74f   :  { %348 = vrot.lane.b32.xlu0 %v1829_v6, %s1703_s15 }
 0x7b9   :  { %v339_v49 = vpop.permute.xlu1 %338 }
 0x7bd   :  { %v347_v50 = vpop.permute.xlu1 %346  ;;  %v341_v51 = vpop.permute.xlu0 %340 }
 0x7be   :  { %v352_v52 = vsel %vm334_vm5, %v339_v49, %v347_v50 }
 0x7bf   :  { %356 = vrot.lane.b32.xlu1 %v352_v52, %s1702_s14 }
 0x7c1   :  { %v349_v53 = vpop.permute.xlu0 %348 }
 0x7c2   :  { %v353_v54 = vsel %vm335_vm6, %v341_v51, %v349_v53 }
 0x7c3   :  { %358 = vrot.lane.b32.xlu0 %v353_v54, %s1702_s14 }
 0x831   :  { %v357_v55 = vpop.permute.xlu1 %356 }
 0x832   :  { %362 = vst.msk [vmem:[#allocation2] sm:$0xff] %vm27_vm0, %v357_v55 }
 0x835   :  { %v359_v56 = vpop.permute.xlu0 %358 }
 0x836   :  { %363 = vst.msk [vmem:[#allocation2 + $0x8] sm:$0xff] %vm27_vm0, %v359_v56 }
 0x837 PF:  { %p1420_p2 = scmp.le.s32.totalorder %s2072_s0, 2 }
 0x838   :  { %s1706_s18 = smov (!%p1420_p2), 64   ;;  %s1707_s23 = smov (!%p1420_p2), 32  }
 0x839   :  { %367 = sbr.rel (%p1420_p2) target bundleno = 3153 (0xc51), region = 25  ;;  %s1708_s24 = smov (!%p1420_p2), 96  }
 0x83e   :  { %v1422_v57 = vcombine.low %v1772_v2, %v1779_v4  ;;  %v1704_v58 = vmov 0.0   ;;  %vm1705_vm7 = vmmov 0   ;;  %v1421_v59 = vcombine.low %v1762_v0, %v1767_v1  ;;  %v1861_v60 = vld [vmem:[#allocation2] sm:$0xff]  ;;  %v1863_v61 = vld [vmem:[#allocation2 + $0x8] sm:$0xff]  ;;  %444 = vrot.lane.b32.xlu0 %v1784_v5, %s1706_s18 }
 0x83f   :  { %1500 = vmatprep.subr.bf16.mxu0 %v1704_v58  ;;  %1504 = vmatprep.mubr.msk.bf16.mxu0 %vm1705_vm7, %v1704_v58  ;;  %v372_v62 = vpack.c.bf16 %v1863_v61, %v1861_v60  ;;  %v370_v11 = vld [vmem:[%s2073_s1 + $0x20] sm:$0xff]  ;;  %v371_v13 = vld [vmem:[%s2073_s1 + $0x28] sm:$0xff] }
 0x840   :  { %1501 = vmatpush3.bf16.msra.mxu0 %v1422_v57 }
 0x841   :  { %1502 = vmatprep.subr.bf16.mxu0 %v1704_v58 }
 0x844   :  { %1503 = vmatpush3.bf16.msra.mxu0 %v1421_v59 }
 0x847   :  { %1505 = vmatmul.mubr.msk.bf16.vlgmr.msra.gmra.mxu0 %vm27_vm0, %v372_v62 }
 0x8b0   :  { %v445_v63 = vpop.permute.xlu0 %444 }
 0x907   :  { %v422_v3 = vpop.f32.mrf.mxu0 }
 0x908   :  { %v447_v6 = vadd.f32 %v445_v63, %v422_v3  ;;  %v429_v12 = vadd.f32 %v422_v3, %v370_v11 }
 0x909   :  { %v1506_v7 = vpop.f32.mrf.mxu0 }
 0x90a   :  { %451 = vrot.lane.b32.xlu0 %v447_v6, %s1706_s18  ;;  %v1424_v14 = vmul.f32 -1.442695, %v429_v12  ;;  %vm501_vm8 = vcmp.gt.f32.partialorder %v429_v12, 0.5 }
 0x90b   :  { %v425_v8 = vpop.f32.mrf.mxu0 }
 0x90c   :  { %v448_v9 = vadd.f32 %v445_v63, %v425_v8  ;;  %v430_v15 = vadd.f32 %v425_v8, %v371_v13  ;;  %1613 = vpow2.f32 %v1424_v14 }
 0x90d   :  { %v1507_v10 = vpop.f32.mrf.mxu0 }
 0x90e   :  { %453 = vrot.lane.b32.xlu1 %v448_v9, %s1706_s18  ;;  %v1425_v16 = vmul.f32 -1.442695, %v430_v15  ;;  %vm502_vm9 = vcmp.gt.f32.partialorder %v430_v15, 0.5 }
 0x910   :  { %1615 = vpow2.f32 %v1425_v16 }
 0x919   :  { %v1614_v17 = vpop.eup %1613 }
 0x91a   :  { %v437_v18 = vadd.f32 1.0, %v1614_v17 }
 0x91c   :  { %1617 = vrcp.f32 %v437_v18 }
 0x91d   :  { %v1616_v19 = vpop.eup %1615 }
 0x91e   :  { %v438_v20 = vadd.f32 1.0, %v1616_v19 }
 0x920   :  { %1619 = vrcp.f32 %v438_v20 }
 0x929   :  { %v1618_v21 = vpop.eup %1617 }
 0x92d   :  { %v1620_v24 = vpop.eup %1619 }
 0x97c   :  { %v452_v22 = vpop.permute.xlu0 %451 }
 0x97d   :  { %v457_v23 = vmul.f32 %v1618_v21, %v452_v22 }
 0x97f   :  { %461 = vrot.lane.b32.xlu1 %v457_v23, %s1706_s18 }
 0x980   :  { %v454_v25 = vpop.permute.xlu1 %453 }
 0x981   :  { %v458_v26 = vmul.f32 %v1620_v24, %v454_v25 }
 0x983   :  { %463 = vrot.lane.b32.xlu0 %v458_v26, %s1706_s18 }
 0x9f1   :  { %v462_v27 = vpop.permute.xlu1 %461 }
 0x9f2   :  { %v467_v28 = vadd.f32 %v462_v27, %v370_v11 }
 0x9f4   :  { %1621 = vtanh.f32 %v467_v28 }
 0x9f5   :  { %v464_v29 = vpop.permute.xlu0 %463 }
 0x9f6   :  { %v468_v30 = vadd.f32 %v464_v29, %v371_v13 }
 0x9f8   :  { %1623 = vtanh.f32 %v468_v30 }
 0xa01   :  { %v1622_v31 = vpop.eup %1621 }
 0xa02   :  { %473 = vrot.lane.b32.xlu1 %v1622_v31, %s1706_s18 }
 0xa05   :  { %v1624_v32 = vpop.eup %1623 }
 0xa06   :  { %475 = vrot.lane.b32.xlu0 %v1624_v32, %s1706_s18 }
 0xa74   :  { %v474_v33 = vpop.permute.xlu1 %473 }
 0xa75   :  { %v479_v34 = vsub.f32 %v1861_v60, %v474_v33 }
 0xa77   :  { %483 = vrot.lane.b32.xlu1 %v479_v34, %s1707_s23 }
 0xa78   :  { %v476_v35 = vpop.permute.xlu0 %475 }
 0xa79   :  { %v480_v36 = vsub.f32 %v1863_v61, %v476_v35 }
 0xa7b   :  { %485 = vrot.lane.b32.xlu0 %v480_v36, %s1707_s23 }
 0xae9   :  { %v484_v37 = vpop.permute.xlu1 %483 }
 0xaea   :  { %v489_v38 = vmul.f32 %v1618_v21, %v484_v37 }
 0xaec   :  { %493 = vrot.lane.b32.xlu1 %v489_v38, %s1707_s23 }
 0xaed   :  { %v486_v39 = vpop.permute.xlu0 %485 }
 0xaee   :  { %v490_v40 = vmul.f32 %v1620_v24, %v486_v39 }
 0xaf0   :  { %495 = vrot.lane.b32.xlu0 %v490_v40, %s1707_s23 }
 0xb5e   :  { %v494_v41 = vpop.permute.xlu1 %493 }
 0xb5f   :  { %v499_v42 = vadd.f32 %v1622_v31, %v494_v41 }
 0xb61   :  { %505 = vrot.lane.b32.xlu1 %v499_v42, %s1707_s23 }
 0xb62   :  { %v496_v43 = vpop.permute.xlu0 %495 }
 0xb63   :  { %v500_v44 = vadd.f32 %v1624_v32, %v496_v43 }
 0xb65   :  { %513 = vrot.lane.b32.xlu1 %v1861_v60, %s1708_s24  ;;  %507 = vrot.lane.b32.xlu0 %v500_v44, %s1707_s23 }
 0xb69   :  { %515 = vrot.lane.b32.xlu0 %v1863_v61, %s1708_s24 }
 0xbd3   :  { %v506_v45 = vpop.permute.xlu1 %505 }
 0xbd7   :  { %v514_v46 = vpop.permute.xlu1 %513  ;;  %v508_v47 = vpop.permute.xlu0 %507 }
 0xbd8   :  { %v519_v48 = vsel %vm501_vm8, %v506_v45, %v514_v46 }
 0xbd9   :  { %523 = vrot.lane.b32.xlu1 %v519_v48, %s1707_s23 }
 0xbdb   :  { %v516_v49 = vpop.permute.xlu0 %515 }
 0xbdc   :  { %v520_v50 = vsel %vm502_vm9, %v508_v47, %v516_v49 }
 0xbdd   :  { %525 = vrot.lane.b32.xlu0 %v520_v50, %s1707_s23 }
 0xc4b   :  { %v524_v51 = vpop.permute.xlu1 %523 }
 0xc4c   :  { %529 = vst.msk [vmem:[#allocation2] sm:$0xff] %vm27_vm0, %v524_v51 }
 0xc4f   :  { %v526_v52 = vpop.permute.xlu0 %525 }
 0xc50   :  { %530 = vst.msk [vmem:[#allocation2 + $0x8] sm:$0xff] %vm27_vm0, %v526_v52 }
 0xc51 PF:  { %p1426_p3 = scmp.le.s32.totalorder %s2072_s0, 3 }
 0xc52   :  { %s1711_s2 = smov (!%p1426_p3), 64   ;;  %s1712_s5 = smov (!%p1426_p3), 32  }
 0xc53   :  { %534 = sbr.rel (%p1426_p3) target bundleno = 4203 (0x106b), region = 29  ;;  %s1713_s6 = smov (!%p1426_p3), 96  }
 0xc58   :  { %v1428_v53 = vcombine.low %v1772_v2, %v1779_v4  ;;  %v1709_v54 = vmov 0.0   ;;  %vm1710_vm10 = vmmov 0   ;;  %v1427_v55 = vcombine.low %v1762_v0, %v1767_v1  ;;  %v1895_v56 = vld [vmem:[#allocation2] sm:$0xff]  ;;  %v1897_v57 = vld [vmem:[#allocation2 + $0x8] sm:$0xff]  ;;  %611 = vrot.lane.b32.xlu0 %v1784_v5, %s1711_s2  ;;  %v537_v7 = vld [vmem:[%s2073_s1 + $0x30] sm:$0xff] }
 0xc59   :  { %1508 = vmatprep.subr.bf16.mxu0 %v1709_v54  ;;  %1512 = vmatprep.mubr.msk.bf16.mxu0 %vm1710_vm10, %v1709_v54  ;;  %v539_v58 = vpack.c.bf16 %v1897_v57, %v1895_v56  ;;  %v538_v9 = vld [vmem:[%s2073_s1 + $0x38] sm:$0xff] }
 0xc5a   :  { %1509 = vmatpush3.bf16.msra.mxu0 %v1428_v53 }
 0xc5b   :  { %1510 = vmatprep.subr.bf16.mxu0 %v1709_v54 }
 0xc5e   :  { %1511 = vmatpush3.bf16.msra.mxu0 %v1427_v55 }
 0xc61   :  { %1513 = vmatmul.mubr.msk.bf16.vlgmr.msra.gmra.mxu0 %vm27_vm0, %v539_v58 }
 0xcca   :  { %v612_v59 = vpop.permute.xlu0 %611 }
 0xd21   :  { %v589_v60 = vpop.f32.mrf.mxu0 }
 0xd22   :  { %v614_v61 = vadd.f32 %v612_v59, %v589_v60  ;;  %v596_v8 = vadd.f32 %v589_v60, %v537_v7 }
 0xd23   :  { %v1514_v62 = vpop.f32.mrf.mxu0 }
 0xd24   :  { %618 = vrot.lane.b32.xlu0 %v614_v61, %s1711_s2  ;;  %v1430_v10 = vmul.f32 -1.442695, %v596_v8  ;;  %vm668_vm11 = vcmp.gt.f32.partialorder %v596_v8, 0.5 }
 0xd25   :  { %v592_v63 = vpop.f32.mrf.mxu0 }
 0xd26   :  { %v615_v3 = vadd.f32 %v612_v59, %v592_v63  ;;  %v597_v11 = vadd.f32 %v592_v63, %v538_v9  ;;  %1625 = vpow2.f32 %v1430_v10 }
 0xd27   :  { %v1515_v6 = vpop.f32.mrf.mxu0 }
 0xd28   :  { %620 = vrot.lane.b32.xlu1 %v615_v3, %s1711_s2  ;;  %v1431_v12 = vmul.f32 -1.442695, %v597_v11  ;;  %vm669_vm12 = vcmp.gt.f32.partialorder %v597_v11, 0.5 }
 0xd2a   :  { %1627 = vpow2.f32 %v1431_v12 }
 0xd33   :  { %v1626_v13 = vpop.eup %1625 }
 0xd34   :  { %v604_v14 = vadd.f32 1.0, %v1626_v13 }
 0xd36   :  { %1629 = vrcp.f32 %v604_v14 }
 0xd37   :  { %v1628_v15 = vpop.eup %1627 }
 0xd38   :  { %v605_v16 = vadd.f32 1.0, %v1628_v15 }
 0xd3a   :  { %1631 = vrcp.f32 %v605_v16 }
 0xd43   :  { %v1630_v17 = vpop.eup %1629 }
 0xd47   :  { %v1632_v20 = vpop.eup %1631 }
 0xd96   :  { %v619_v18 = vpop.permute.xlu0 %618 }
 0xd97   :  { %v624_v19 = vmul.f32 %v1630_v17, %v619_v18 }
 0xd99   :  { %628 = vrot.lane.b32.xlu1 %v624_v19, %s1711_s2 }
 0xd9a   :  { %v621_v21 = vpop.permute.xlu1 %620 }
 0xd9b   :  { %v625_v22 = vmul.f32 %v1632_v20, %v621_v21 }
 0xd9d   :  { %630 = vrot.lane.b32.xlu0 %v625_v22, %s1711_s2 }
 0xe0b   :  { %v629_v23 = vpop.permute.xlu1 %628 }
 0xe0c   :  { %v634_v24 = vadd.f32 %v629_v23, %v537_v7 }
 0xe0e   :  { %1633 = vtanh.f32 %v634_v24 }
 0xe0f   :  { %v631_v25 = vpop.permute.xlu0 %630 }
 0xe10   :  { %v635_v26 = vadd.f32 %v631_v25, %v538_v9 }
 0xe12   :  { %1635 = vtanh.f32 %v635_v26 }
 0xe1b   :  { %v1634_v27 = vpop.eup %1633 }
 0xe1c   :  { %640 = vrot.lane.b32.xlu1 %v1634_v27, %s1711_s2 }
 0xe1f   :  { %v1636_v28 = vpop.eup %1635 }
 0xe20   :  { %642 = vrot.lane.b32.xlu0 %v1636_v28, %s1711_s2 }
 0xe8e   :  { %v641_v29 = vpop.permute.xlu1 %640 }
 0xe8f   :  { %v646_v30 = vsub.f32 %v1895_v56, %v641_v29 }
 0xe91   :  { %650 = vrot.lane.b32.xlu1 %v646_v30, %s1712_s5 }
 0xe92   :  { %v643_v31 = vpop.permute.xlu0 %642 }
 0xe93   :  { %v647_v32 = vsub.f32 %v1897_v57, %v643_v31 }
 0xe95   :  { %652 = vrot.lane.b32.xlu0 %v647_v32, %s1712_s5 }
 0xf03   :  { %v651_v33 = vpop.permute.xlu1 %650 }
 0xf04   :  { %v656_v34 = vmul.f32 %v1630_v17, %v651_v33 }
 0xf06   :  { %660 = vrot.lane.b32.xlu1 %v656_v34, %s1712_s5 }
 0xf07   :  { %v653_v35 = vpop.permute.xlu0 %652 }
 0xf08   :  { %v657_v36 = vmul.f32 %v1632_v20, %v653_v35 }
 0xf0a   :  { %662 = vrot.lane.b32.xlu0 %v657_v36, %s1712_s5 }
 0xf78   :  { %v661_v37 = vpop.permute.xlu1 %660 }
 0xf79   :  { %v666_v38 = vadd.f32 %v1634_v27, %v661_v37 }
 0xf7b   :  { %672 = vrot.lane.b32.xlu1 %v666_v38, %s1712_s5 }
 0xf7c   :  { %v663_v39 = vpop.permute.xlu0 %662 }
 0xf7d   :  { %v667_v40 = vadd.f32 %v1636_v28, %v663_v39 }
 0xf7f   :  { %680 = vrot.lane.b32.xlu1 %v1895_v56, %s1713_s6  ;;  %674 = vrot.lane.b32.xlu0 %v667_v40, %s1712_s5 }
 0xf83   :  { %682 = vrot.lane.b32.xlu0 %v1897_v57, %s1713_s6 }
 0xfed   :  { %v673_v41 = vpop.permute.xlu1 %672 }
 0xff1   :  { %v681_v42 = vpop.permute.xlu1 %680  ;;  %v675_v43 = vpop.permute.xlu0 %674 }
 0xff2   :  { %v686_v44 = vsel %vm668_vm11, %v673_v41, %v681_v42 }
 0xff3   :  { %690 = vrot.lane.b32.xlu1 %v686_v44, %s1712_s5 }
 0xff5   :  { %v683_v45 = vpop.permute.xlu0 %682 }
 0xff6   :  { %v687_v46 = vsel %vm669_vm12, %v675_v43, %v683_v45 }
 0xff7   :  { %692 = vrot.lane.b32.xlu0 %v687_v46, %s1712_s5 }
0x1065   :  { %v691_v47 = vpop.permute.xlu1 %690 }
0x1066   :  { %696 = vst.msk [vmem:[#allocation2] sm:$0xff] %vm27_vm0, %v691_v47 }
0x1069   :  { %v693_v48 = vpop.permute.xlu0 %692 }
0x106a   :  { %697 = vst.msk [vmem:[#allocation2 + $0x8] sm:$0xff] %vm27_vm0, %v693_v48 }
0x106b PF:  { %p1432_p4 = scmp.le.s32.totalorder %s2072_s0, 4 }
0x106c   :  { %s1716_s9 = smov (!%p1432_p4), 64   ;;  %s1717_s14 = smov (!%p1432_p4), 32  }
0x106d   :  { %701 = sbr.rel (%p1432_p4) target bundleno = 5253 (0x1485), region = 33  ;;  %s1718_s15 = smov (!%p1432_p4), 96  }
0x1072   :  { %v1434_v49 = vcombine.low %v1772_v2, %v1779_v4  ;;  %v1714_v50 = vmov 0.0   ;;  %vm1715_vm13 = vmmov 0   ;;  %v1433_v51 = vcombine.low %v1762_v0, %v1767_v1  ;;  %v1929_v52 = vld [vmem:[#allocation2] sm:$0xff]  ;;  %v1931_v53 = vld [vmem:[#allocation2 + $0x8] sm:$0xff]  ;;  %778 = vrot.lane.b32.xlu0 %v1784_v5, %s1716_s9 }
0x1073   :  { %1516 = vmatprep.subr.bf16.mxu0 %v1714_v50  ;;  %1520 = vmatprep.mubr.msk.bf16.mxu0 %vm1715_vm13, %v1714_v50  ;;  %v706_v54 = vpack.c.bf16 %v1931_v53, %v1929_v52  ;;  %v704_v62 = vld [vmem:[%s2073_s1 + $0x40] sm:$0xff]  ;;  %v705_v3 = vld [vmem:[%s2073_s1 + $0x48] sm:$0xff] }
0x1074   :  { %1517 = vmatpush3.bf16.msra.mxu0 %v1434_v49 }
0x1075   :  { %1518 = vmatprep.subr.bf16.mxu0 %v1714_v50 }
0x1078   :  { %1519 = vmatpush3.bf16.msra.mxu0 %v1433_v51 }
0x107b   :  { %1521 = vmatmul.mubr.msk.bf16.vlgmr.msra.gmra.mxu0 %vm27_vm0, %v706_v54 }
0x10e4   :  { %v779_v55 = vpop.permute.xlu0 %778 }
0x113b   :  { %v756_v56 = vpop.f32.mrf.mxu0 }
0x113c   :  { %v781_v57 = vadd.f32 %v779_v55, %v756_v56  ;;  %v763_v63 = vadd.f32 %v756_v56, %v704_v62 }
0x113d   :  { %v1522_v58 = vpop.f32.mrf.mxu0 }
0x113e   :  { %785 = vrot.lane.b32.xlu0 %v781_v57, %s1716_s9  ;;  %v1436_v6 = vmul.f32 -1.442695, %v763_v63  ;;  %vm835_vm14 = vcmp.gt.f32.partialorder %v763_v63, 0.5 }
0x113f   :  { %v759_v59 = vpop.f32.mrf.mxu0 }
0x1140   :  { %v782_v60 = vadd.f32 %v779_v55, %v759_v59  ;;  %v764_v7 = vadd.f32 %v759_v59, %v705_v3  ;;  %1637 = vpow2.f32 %v1436_v6 }
0x1141   :  { %v1523_v61 = vpop.f32.mrf.mxu0 }
0x1142   :  { %787 = vrot.lane.b32.xlu1 %v782_v60, %s1716_s9  ;;  %v1437_v8 = vmul.f32 -1.442695, %v764_v7  ;;  %vm836_vm15 = vcmp.gt.f32.partialorder %v764_v7, 0.5 }
0x1144   :  { %1639 = vpow2.f32 %v1437_v8 }
0x114d   :  { %v1638_v9 = vpop.eup %1637 }
0x114e   :  { %v771_v10 = vadd.f32 1.0, %v1638_v9 }
0x1150   :  { %1641 = vrcp.f32 %v771_v10 }
0x1151   :  { %v1640_v11 = vpop.eup %1639 }
0x1152   :  { %v772_v12 = vadd.f32 1.0, %v1640_v11 }
0x1154   :  { %1643 = vrcp.f32 %v772_v12 }
0x115d   :  { %v1642_v13 = vpop.eup %1641 }
0x1161   :  { %v1644_v16 = vpop.eup %1643 }
0x11b0   :  { %v786_v14 = vpop.permute.xlu0 %785 }
0x11b1   :  { %v791_v15 = vmul.f32 %v1642_v13, %v786_v14 }
0x11b3   :  { %795 = vrot.lane.b32.xlu1 %v791_v15, %s1716_s9 }
0x11b4   :  { %v788_v17 = vpop.permute.xlu1 %787 }
0x11b5   :  { %v792_v18 = vmul.f32 %v1644_v16, %v788_v17 }
0x11b7   :  { %797 = vrot.lane.b32.xlu0 %v792_v18, %s1716_s9 }
0x1225   :  { %v796_v19 = vpop.permute.xlu1 %795 }
0x1226   :  { %v801_v20 = vadd.f32 %v796_v19, %v704_v62 }
0x1228   :  { %1645 = vtanh.f32 %v801_v20 }
0x1229   :  { %v798_v21 = vpop.permute.xlu0 %797 }
0x122a   :  { %v802_v22 = vadd.f32 %v798_v21, %v705_v3 }
0x122c   :  { %1647 = vtanh.f32 %v802_v22 }
0x1235   :  { %v1646_v23 = vpop.eup %1645 }
0x1236   :  { %807 = vrot.lane.b32.xlu1 %v1646_v23, %s1716_s9 }
0x1239   :  { %v1648_v24 = vpop.eup %1647 }
0x123a   :  { %809 = vrot.lane.b32.xlu0 %v1648_v24, %s1716_s9 }
0x12a8   :  { %v808_v25 = vpop.permute.xlu1 %807 }
0x12a9   :  { %v813_v26 = vsub.f32 %v1929_v52, %v808_v25 }
0x12ab   :  { %817 = vrot.lane.b32.xlu1 %v813_v26, %s1717_s14 }
0x12ac   :  { %v810_v27 = vpop.permute.xlu0 %809 }
0x12ad   :  { %v814_v28 = vsub.f32 %v1931_v53, %v810_v27 }
0x12af   :  { %819 = vrot.lane.b32.xlu0 %v814_v28, %s1717_s14 }
0x131d   :  { %v818_v29 = vpop.permute.xlu1 %817 }
0x131e   :  { %v823_v30 = vmul.f32 %v1642_v13, %v818_v29 }
0x1320   :  { %827 = vrot.lane.b32.xlu1 %v823_v30, %s1717_s14 }
0x1321   :  { %v820_v31 = vpop.permute.xlu0 %819 }
0x1322   :  { %v824_v32 = vmul.f32 %v1644_v16, %v820_v31 }
0x1324   :  { %829 = vrot.lane.b32.xlu0 %v824_v32, %s1717_s14 }
0x1392   :  { %v828_v33 = vpop.permute.xlu1 %827 }
0x1393   :  { %v833_v34 = vadd.f32 %v1646_v23, %v828_v33 }
0x1395   :  { %839 = vrot.lane.b32.xlu1 %v833_v34, %s1717_s14 }
0x1396   :  { %v830_v35 = vpop.permute.xlu0 %829 }
0x1397   :  { %v834_v36 = vadd.f32 %v1648_v24, %v830_v35 }
0x1399   :  { %847 = vrot.lane.b32.xlu1 %v1929_v52, %s1718_s15  ;;  %841 = vrot.lane.b32.xlu0 %v834_v36, %s1717_s14 }
0x139d   :  { %849 = vrot.lane.b32.xlu0 %v1931_v53, %s1718_s15 }
0x1407   :  { %v840_v37 = vpop.permute.xlu1 %839 }
0x140b   :  { %v848_v38 = vpop.permute.xlu1 %847  ;;  %v842_v39 = vpop.permute.xlu0 %841 }
0x140c   :  { %v853_v40 = vsel %vm835_vm14, %v840_v37, %v848_v38 }
0x140d   :  { %857 = vrot.lane.b32.xlu1 %v853_v40, %s1717_s14 }
0x140f   :  { %v850_v41 = vpop.permute.xlu0 %849 }
0x1410   :  { %v854_v42 = vsel %vm836_vm15, %v842_v39, %v850_v41 }
0x1411   :  { %859 = vrot.lane.b32.xlu0 %v854_v42, %s1717_s14 }
0x147f   :  { %v858_v43 = vpop.permute.xlu1 %857 }
0x1480   :  { %863 = vst.msk [vmem:[#allocation2] sm:$0xff] %vm27_vm0, %v858_v43 }
0x1483   :  { %v860_v44 = vpop.permute.xlu0 %859 }
0x1484   :  { %864 = vst.msk [vmem:[#allocation2 + $0x8] sm:$0xff] %vm27_vm0, %v860_v44 }
0x1485 PF:  { %p1438_p5 = scmp.le.s32.totalorder %s2072_s0, 5 }
0x1486   :  { %s1721_s18 = smov (!%p1438_p5), 64   ;;  %s1722_s23 = smov (!%p1438_p5), 32  }
0x1487   :  { %868 = sbr.rel (%p1438_p5) target bundleno = 6303 (0x189f), region = 37  ;;  %s1723_s24 = smov (!%p1438_p5), 96  }
0x148c   :  { %v1440_v45 = vcombine.low %v1772_v2, %v1779_v4  ;;  %v1719_v46 = vmov 0.0   ;;  %vm1720_vm1 = vmmov 0   ;;  %v1439_v47 = vcombine.low %v1762_v0, %v1767_v1  ;;  %v1963_v48 = vld [vmem:[#allocation2] sm:$0xff]  ;;  %v1965_v49 = vld [vmem:[#allocation2 + $0x8] sm:$0xff]  ;;  %945 = vrot.lane.b32.xlu0 %v1784_v5, %s1721_s18  ;;  %v871_v58 = vld [vmem:[%s2073_s1 + $0x50] sm:$0xff] }
0x148d   :  { %1524 = vmatprep.subr.bf16.mxu0 %v1719_v46  ;;  %1528 = vmatprep.mubr.msk.bf16.mxu0 %vm1720_vm1, %v1719_v46  ;;  %v873_v50 = vpack.c.bf16 %v1965_v49, %v1963_v48  ;;  %v872_v60 = vld [vmem:[%s2073_s1 + $0x58] sm:$0xff] }
0x148e   :  { %1525 = vmatpush3.bf16.msra.mxu0 %v1440_v45 }
0x148f   :  { %1526 = vmatprep.subr.bf16.mxu0 %v1719_v46 }
0x1492   :  { %1527 = vmatpush3.bf16.msra.mxu0 %v1439_v47 }
0x1495   :  { %1529 = vmatmul.mubr.msk.bf16.vlgmr.msra.gmra.mxu0 %vm27_vm0, %v873_v50 }
0x14fe   :  { %v946_v51 = vpop.permute.xlu0 %945 }
0x1555   :  { %v923_v52 = vpop.f32.mrf.mxu0 }
0x1556   :  { %v948_v53 = vadd.f32 %v946_v51, %v923_v52  ;;  %v930_v59 = vadd.f32 %v923_v52, %v871_v58 }
0x1557   :  { %v1530_v54 = vpop.f32.mrf.mxu0 }
0x1558   :  { %952 = vrot.lane.b32.xlu0 %v948_v53, %s1721_s18  ;;  %v1442_v61 = vmul.f32 -1.442695, %v930_v59  ;;  %vm1002_vm2 = vcmp.gt.f32.partialorder %v930_v59, 0.5 }
0x1559   :  { %v926_v55 = vpop.f32.mrf.mxu0 }
0x155a   :  { %v949_v56 = vadd.f32 %v946_v51, %v926_v55  ;;  %v931_v62 = vadd.f32 %v926_v55, %v872_v60  ;;  %1649 = vpow2.f32 %v1442_v61 }
0x155b   :  { %v1531_v57 = vpop.f32.mrf.mxu0 }
0x155c   :  { %954 = vrot.lane.b32.xlu1 %v949_v56, %s1721_s18  ;;  %v1443_v63 = vmul.f32 -1.442695, %v931_v62  ;;  %vm1003_vm3 = vcmp.gt.f32.partialorder %v931_v62, 0.5 }
0x155e   :  { %1651 = vpow2.f32 %v1443_v63 }
0x1567   :  { %v1650_v3 = vpop.eup %1649 }
0x1568   :  { %v938_v6 = vadd.f32 1.0, %v1650_v3 }
0x156a   :  { %1653 = vrcp.f32 %v938_v6 }
0x156b   :  { %v1652_v7 = vpop.eup %1651 }
0x156c   :  { %v939_v8 = vadd.f32 1.0, %v1652_v7 }
0x156e   :  { %1655 = vrcp.f32 %v939_v8 }
0x1577   :  { %v1654_v9 = vpop.eup %1653 }
0x157b   :  { %v1656_v12 = vpop.eup %1655 }
0x15ca   :  { %v953_v10 = vpop.permute.xlu0 %952 }
0x15cb   :  { %v958_v11 = vmul.f32 %v1654_v9, %v953_v10 }
0x15cd   :  { %962 = vrot.lane.b32.xlu1 %v958_v11, %s1721_s18 }
0x15ce   :  { %v955_v13 = vpop.permute.xlu1 %954 }
0x15cf   :  { %v959_v14 = vmul.f32 %v1656_v12, %v955_v13 }
0x15d1   :  { %964 = vrot.lane.b32.xlu0 %v959_v14, %s1721_s18 }
0x163f   :  { %v963_v15 = vpop.permute.xlu1 %962 }
0x1640   :  { %v968_v16 = vadd.f32 %v963_v15, %v871_v58 }
0x1642   :  { %1657 = vtanh.f32 %v968_v16 }
0x1643   :  { %v965_v17 = vpop.permute.xlu0 %964 }
0x1644   :  { %v969_v18 = vadd.f32 %v965_v17, %v872_v60 }
0x1646   :  { %1659 = vtanh.f32 %v969_v18 }
0x164f   :  { %v1658_v19 = vpop.eup %1657 }
0x1650   :  { %974 = vrot.lane.b32.xlu1 %v1658_v19, %s1721_s18 }
0x1653   :  { %v1660_v20 = vpop.eup %1659 }
0x1654   :  { %976 = vrot.lane.b32.xlu0 %v1660_v20, %s1721_s18 }
0x16c2   :  { %v975_v21 = vpop.permute.xlu1 %974 }
0x16c3   :  { %v980_v22 = vsub.f32 %v1963_v48, %v975_v21 }
0x16c5   :  { %984 = vrot.lane.b32.xlu1 %v980_v22, %s1722_s23 }
0x16c6   :  { %v977_v23 = vpop.permute.xlu0 %976 }
0x16c7   :  { %v981_v24 = vsub.f32 %v1965_v49, %v977_v23 }
0x16c9   :  { %986 = vrot.lane.b32.xlu0 %v981_v24, %s1722_s23 }
0x1737   :  { %v985_v25 = vpop.permute.xlu1 %984 }
0x1738   :  { %v990_v26 = vmul.f32 %v1654_v9, %v985_v25 }
0x173a   :  { %994 = vrot.lane.b32.xlu1 %v990_v26, %s1722_s23 }
0x173b   :  { %v987_v27 = vpop.permute.xlu0 %986 }
0x173c   :  { %v991_v28 = vmul.f32 %v1656_v12, %v987_v27 }
0x173e   :  { %996 = vrot.lane.b32.xlu0 %v991_v28, %s1722_s23 }
0x17ac   :  { %v995_v29 = vpop.permute.xlu1 %994 }
0x17ad   :  { %v1000_v30 = vadd.f32 %v1658_v19, %v995_v29 }
0x17af   :  { %1006 = vrot.lane.b32.xlu1 %v1000_v30, %s1722_s23 }
0x17b0   :  { %v997_v31 = vpop.permute.xlu0 %996 }
0x17b1   :  { %v1001_v32 = vadd.f32 %v1660_v20, %v997_v31 }
0x17b3   :  { %1014 = vrot.lane.b32.xlu1 %v1963_v48, %s1723_s24  ;;  %1008 = vrot.lane.b32.xlu0 %v1001_v32, %s1722_s23 }
0x17b7   :  { %1016 = vrot.lane.b32.xlu0 %v1965_v49, %s1723_s24 }
0x1821   :  { %v1007_v33 = vpop.permute.xlu1 %1006 }
0x1825   :  { %v1015_v34 = vpop.permute.xlu1 %1014  ;;  %v1009_v35 = vpop.permute.xlu0 %1008 }
0x1826   :  { %v1020_v36 = vsel %vm1002_vm2, %v1007_v33, %v1015_v34 }
0x1827   :  { %1024 = vrot.lane.b32.xlu1 %v1020_v36, %s1722_s23 }
0x1829   :  { %v1017_v37 = vpop.permute.xlu0 %1016 }
0x182a   :  { %v1021_v38 = vsel %vm1003_vm3, %v1009_v35, %v1017_v37 }
0x182b   :  { %1026 = vrot.lane.b32.xlu0 %v1021_v38, %s1722_s23 }
0x1899   :  { %v1025_v39 = vpop.permute.xlu1 %1024 }
0x189a   :  { %1030 = vst.msk [vmem:[#allocation2] sm:$0xff] %vm27_vm0, %v1025_v39 }
0x189d   :  { %v1027_v40 = vpop.permute.xlu0 %1026 }
0x189e   :  { %1031 = vst.msk [vmem:[#allocation2 + $0x8] sm:$0xff] %vm27_vm0, %v1027_v40 }
0x189f PF:  { %p1444_p6 = scmp.le.s32.totalorder %s2072_s0, 6 }
0x18a0   :  { %s1726_s2 = smov (!%p1444_p6), 64   ;;  %s1727_s5 = smov (!%p1444_p6), 32  }
0x18a1   :  { %1035 = sbr.rel (%p1444_p6) target bundleno = 7353 (0x1cb9), region = 41  ;;  %s1728_s6 = smov (!%p1444_p6), 96  }
0x18a6   :  { %v1446_v41 = vcombine.low %v1772_v2, %v1779_v4  ;;  %v1724_v42 = vmov 0.0   ;;  %vm1725_vm4 = vmmov 0   ;;  %v1445_v43 = vcombine.low %v1762_v0, %v1767_v1  ;;  %v1997_v44 = vld [vmem:[#allocation2] sm:$0xff]  ;;  %v1999_v45 = vld [vmem:[#allocation2 + $0x8] sm:$0xff]  ;;  %1112 = vrot.lane.b32.xlu0 %v1784_v5, %s1726_s2 }
0x18a7   :  { %1532 = vmatprep.subr.bf16.mxu0 %v1724_v42  ;;  %1536 = vmatprep.mubr.msk.bf16.mxu0 %vm1725_vm4, %v1724_v42  ;;  %v1040_v46 = vpack.c.bf16 %v1999_v45, %v1997_v44  ;;  %v1038_v54 = vld [vmem:[%s2073_s1 + $0x60] sm:$0xff]  ;;  %v1039_v56 = vld [vmem:[%s2073_s1 + $0x68] sm:$0xff] }
0x18a8   :  { %1533 = vmatpush3.bf16.msra.mxu0 %v1446_v41 }
0x18a9   :  { %1534 = vmatprep.subr.bf16.mxu0 %v1724_v42 }
0x18ac   :  { %1535 = vmatpush3.bf16.msra.mxu0 %v1445_v43 }
0x18af   :  { %1537 = vmatmul.mubr.msk.bf16.vlgmr.msra.gmra.mxu0 %vm27_vm0, %v1040_v46 }
0x1918   :  { %v1113_v47 = vpop.permute.xlu0 %1112 }
0x196f   :  { %v1090_v48 = vpop.f32.mrf.mxu0 }
0x1970   :  { %v1115_v49 = vadd.f32 %v1113_v47, %v1090_v48  ;;  %v1097_v55 = vadd.f32 %v1090_v48, %v1038_v54 }
0x1971   :  { %v1538_v50 = vpop.f32.mrf.mxu0 }
0x1972   :  { %1119 = vrot.lane.b32.xlu0 %v1115_v49, %s1726_s2  ;;  %v1448_v57 = vmul.f32 -1.442695, %v1097_v55  ;;  %vm1169_vm5 = vcmp.gt.f32.partialorder %v1097_v55, 0.5 }
0x1973   :  { %v1093_v51 = vpop.f32.mrf.mxu0 }
0x1974   :  { %v1116_v52 = vadd.f32 %v1113_v47, %v1093_v51  ;;  %v1098_v58 = vadd.f32 %v1093_v51, %v1039_v56  ;;  %1661 = vpow2.f32 %v1448_v57 }
0x1975   :  { %v1539_v53 = vpop.f32.mrf.mxu0 }
0x1976   :  { %1121 = vrot.lane.b32.xlu1 %v1116_v52, %s1726_s2  ;;  %v1449_v59 = vmul.f32 -1.442695, %v1098_v58  ;;  %vm1170_vm6 = vcmp.gt.f32.partialorder %v1098_v58, 0.5 }
0x1978   :  { %1663 = vpow2.f32 %v1449_v59 }
0x1981   :  { %v1662_v60 = vpop.eup %1661 }
0x1982   :  { %v1105_v61 = vadd.f32 1.0, %v1662_v60 }
0x1984   :  { %1665 = vrcp.f32 %v1105_v61 }
0x1985   :  { %v1664_v62 = vpop.eup %1663 }
0x1986   :  { %v1106_v63 = vadd.f32 1.0, %v1664_v62 }
0x1988   :  { %1667 = vrcp.f32 %v1106_v63 }
0x1991   :  { %v1666_v3 = vpop.eup %1665 }
0x1995   :  { %v1668_v8 = vpop.eup %1667 }
0x19e4   :  { %v1120_v6 = vpop.permute.xlu0 %1119 }
0x19e5   :  { %v1125_v7 = vmul.f32 %v1666_v3, %v1120_v6 }
0x19e7   :  { %1129 = vrot.lane.b32.xlu1 %v1125_v7, %s1726_s2 }
0x19e8   :  { %v1122_v9 = vpop.permute.xlu1 %1121 }
0x19e9   :  { %v1126_v10 = vmul.f32 %v1668_v8, %v1122_v9 }
0x19eb   :  { %1131 = vrot.lane.b32.xlu0 %v1126_v10, %s1726_s2 }
0x1a59   :  { %v1130_v11 = vpop.permute.xlu1 %1129 }
0x1a5a   :  { %v1135_v12 = vadd.f32 %v1130_v11, %v1038_v54 }
0x1a5c   :  { %1669 = vtanh.f32 %v1135_v12 }
0x1a5d   :  { %v1132_v13 = vpop.permute.xlu0 %1131 }
0x1a5e   :  { %v1136_v14 = vadd.f32 %v1132_v13, %v1039_v56 }
0x1a60   :  { %1671 = vtanh.f32 %v1136_v14 }
0x1a69   :  { %v1670_v15 = vpop.eup %1669 }
0x1a6a   :  { %1141 = vrot.lane.b32.xlu1 %v1670_v15, %s1726_s2 }
0x1a6d   :  { %v1672_v16 = vpop.eup %1671 }
0x1a6e   :  { %1143 = vrot.lane.b32.xlu0 %v1672_v16, %s1726_s2 }
0x1adc   :  { %v1142_v17 = vpop.permute.xlu1 %1141 }
0x1add   :  { %v1147_v18 = vsub.f32 %v1997_v44, %v1142_v17 }
0x1adf   :  { %1151 = vrot.lane.b32.xlu1 %v1147_v18, %s1727_s5 }
0x1ae0   :  { %v1144_v19 = vpop.permute.xlu0 %1143 }
0x1ae1   :  { %v1148_v20 = vsub.f32 %v1999_v45, %v1144_v19 }
0x1ae3   :  { %1153 = vrot.lane.b32.xlu0 %v1148_v20, %s1727_s5 }
0x1b51   :  { %v1152_v21 = vpop.permute.xlu1 %1151 }
0x1b52   :  { %v1157_v22 = vmul.f32 %v1666_v3, %v1152_v21 }
0x1b54   :  { %1161 = vrot.lane.b32.xlu1 %v1157_v22, %s1727_s5 }
0x1b55   :  { %v1154_v23 = vpop.permute.xlu0 %1153 }
0x1b56   :  { %v1158_v24 = vmul.f32 %v1668_v8, %v1154_v23 }
0x1b58   :  { %1163 = vrot.lane.b32.xlu0 %v1158_v24, %s1727_s5 }
0x1bc6   :  { %v1162_v25 = vpop.permute.xlu1 %1161 }
0x1bc7   :  { %v1167_v26 = vadd.f32 %v1670_v15, %v1162_v25 }
0x1bc9   :  { %1173 = vrot.lane.b32.xlu1 %v1167_v26, %s1727_s5 }
0x1bca   :  { %v1164_v27 = vpop.permute.xlu0 %1163 }
0x1bcb   :  { %v1168_v28 = vadd.f32 %v1672_v16, %v1164_v27 }
0x1bcd   :  { %1181 = vrot.lane.b32.xlu1 %v1997_v44, %s1728_s6  ;;  %1175 = vrot.lane.b32.xlu0 %v1168_v28, %s1727_s5 }
0x1bd1   :  { %1183 = vrot.lane.b32.xlu0 %v1999_v45, %s1728_s6 }
0x1c3b   :  { %v1174_v29 = vpop.permute.xlu1 %1173 }
0x1c3f   :  { %v1182_v30 = vpop.permute.xlu1 %1181  ;;  %v1176_v31 = vpop.permute.xlu0 %1175 }
0x1c40   :  { %v1187_v32 = vsel %vm1169_vm5, %v1174_v29, %v1182_v30 }
0x1c41   :  { %1191 = vrot.lane.b32.xlu1 %v1187_v32, %s1727_s5 }
0x1c43   :  { %v1184_v33 = vpop.permute.xlu0 %1183 }
0x1c44   :  { %v1188_v34 = vsel %vm1170_vm6, %v1176_v31, %v1184_v33 }
0x1c45   :  { %1193 = vrot.lane.b32.xlu0 %v1188_v34, %s1727_s5 }
0x1cb3   :  { %v1192_v35 = vpop.permute.xlu1 %1191 }
0x1cb4   :  { %1197 = vst.msk [vmem:[#allocation2] sm:$0xff] %vm27_vm0, %v1192_v35 }
0x1cb7   :  { %v1194_v36 = vpop.permute.xlu0 %1193 }
0x1cb8   :  { %1198 = vst.msk [vmem:[#allocation2 + $0x8] sm:$0xff] %vm27_vm0, %v1194_v36 }
0x1cb9 PF:  { %p1450_p7 = scmp.le.s32.totalorder %s2072_s0, 7 }
0x1cba   :  { %s1731_s9 = smov (!%p1450_p7), 64   ;;  %s1733_s13 = smov (!%p1450_p7), 96  }
0x1cbb   :  { %1202 = sbr.rel (%p1450_p7) target bundleno = 8403 (0x20d3), region = 45 }
0x1cc0   :  { %v1452_v37 = vcombine.low %v1772_v2, %v1779_v4  ;;  %v1729_v38 = vmov 0.0   ;;  %vm1730_vm7 = vmmov 0   ;;  %v1451_v39 = vcombine.low %v1762_v0, %v1767_v1  ;;  %v2031_v40 = vld [vmem:[#allocation2] sm:$0xff]  ;;  %v2033_v41 = vld [vmem:[#allocation2 + $0x8] sm:$0xff]  ;;  %1279 = vrot.lane.b32.xlu0 %v1784_v5, %s1731_s9  ;;  %v1205_v5 = vld [vmem:[%s2073_s1 + $0x70] sm:$0xff] }
0x1cc1   :  { %1540 = vmatprep.subr.bf16.mxu0 %v1729_v38  ;;  %1544 = vmatprep.mubr.msk.bf16.mxu0 %vm1730_vm7, %v1729_v38  ;;  %v1207_v2 = vpack.c.bf16 %v2033_v41, %v2031_v40  ;;  %v1206_v47 = vld [vmem:[%s2073_s1 + $0x78] sm:$0xff]  ;;  %s1732_s1 = smov 32  }
0x1cc2   :  { %1541 = vmatpush3.bf16.msra.mxu0 %v1452_v37 }
0x1cc3   :  { %1542 = vmatprep.subr.bf16.mxu0 %v1729_v38 }
0x1cc6   :  { %1543 = vmatpush3.bf16.msra.mxu0 %v1451_v39 }
0x1cc9   :  { %1545 = vmatmul.mubr.msk.bf16.vlgmr.msra.gmra.mxu0 %vm27_vm0, %v1207_v2 }
0x1d32   :  { %v1280_v4 = vpop.permute.xlu0 %1279 }
0x1d89   :  { %v1257_v42 = vpop.f32.mrf.mxu0 }
0x1d8a   :  { %v1282_v43 = vadd.f32 %v1280_v4, %v1257_v42  ;;  %v1264_v46 = vadd.f32 %v1257_v42, %v1205_v5 }
0x1d8b   :  { %v1546_v44 = vpop.f32.mrf.mxu0 }
0x1d8c   :  { %1286 = vrot.lane.b32.xlu0 %v1282_v43, %s1731_s9  ;;  %v1454_v48 = vmul.f32 -1.442695, %v1264_v46  ;;  %vm1336_vm8 = vcmp.gt.f32.partialorder %v1264_v46, 0.5 }
0x1d8d   :  { %v1260_v0 = vpop.f32.mrf.mxu0 }
0x1d8e   :  { %v1283_v1 = vadd.f32 %v1280_v4, %v1260_v0  ;;  %v1265_v49 = vadd.f32 %v1260_v0, %v1206_v47  ;;  %1673 = vpow2.f32 %v1454_v48 }
0x1d8f   :  { %v1547_v45 = vpop.f32.mrf.mxu0 }
0x1d90   :  { %1288 = vrot.lane.b32.xlu1 %v1283_v1, %s1731_s9  ;;  %v1455_v50 = vmul.f32 -1.442695, %v1265_v49  ;;  %vm1337_vm9 = vcmp.gt.f32.partialorder %v1265_v49, 0.5 }
0x1d92   :  { %1675 = vpow2.f32 %v1455_v50 }
0x1d9b   :  { %v1674_v51 = vpop.eup %1673 }
0x1d9c   :  { %v1272_v52 = vadd.f32 1.0, %v1674_v51 }
0x1d9e   :  { %1677 = vrcp.f32 %v1272_v52 }
0x1d9f   :  { %v1676_v53 = vpop.eup %1675 }
0x1da0   :  { %v1273_v54 = vadd.f32 1.0, %v1676_v53 }
0x1da2   :  { %1679 = vrcp.f32 %v1273_v54 }
0x1dab   :  { %v1678_v55 = vpop.eup %1677 }
0x1daf   :  { %v1680_v58 = vpop.eup %1679 }
0x1dfe   :  { %v1287_v56 = vpop.permute.xlu0 %1286 }
0x1dff   :  { %v1292_v57 = vmul.f32 %v1678_v55, %v1287_v56 }
0x1e01   :  { %1296 = vrot.lane.b32.xlu1 %v1292_v57, %s1731_s9 }
0x1e02   :  { %v1289_v59 = vpop.permute.xlu1 %1288 }
0x1e03   :  { %v1293_v60 = vmul.f32 %v1680_v58, %v1289_v59 }
0x1e05   :  { %1298 = vrot.lane.b32.xlu0 %v1293_v60, %s1731_s9 }
0x1e73   :  { %v1297_v61 = vpop.permute.xlu1 %1296 }
0x1e74   :  { %v1302_v62 = vadd.f32 %v1297_v61, %v1205_v5 }
0x1e76   :  { %1681 = vtanh.f32 %v1302_v62 }
0x1e77   :  { %v1299_v63 = vpop.permute.xlu0 %1298 }
0x1e78   :  { %v1303_v3 = vadd.f32 %v1299_v63, %v1206_v47 }
0x1e7a   :  { %1683 = vtanh.f32 %v1303_v3 }
0x1e83   :  { %v1682_v6 = vpop.eup %1681 }
0x1e84   :  { %1308 = vrot.lane.b32.xlu1 %v1682_v6, %s1731_s9 }
0x1e87   :  { %v1684_v7 = vpop.eup %1683 }
0x1e88   :  { %1310 = vrot.lane.b32.xlu0 %v1684_v7, %s1731_s9 }
0x1ef6   :  { %v1309_v8 = vpop.permute.xlu1 %1308 }
0x1ef7   :  { %v1314_v9 = vsub.f32 %v2031_v40, %v1309_v8 }
0x1ef9   :  { %1318 = vrot.lane.b32.xlu1 %v1314_v9, %s1732_s1 }
0x1efa   :  { %v1311_v10 = vpop.permute.xlu0 %1310 }
0x1efb   :  { %v1315_v11 = vsub.f32 %v2033_v41, %v1311_v10 }
0x1efd   :  { %1320 = vrot.lane.b32.xlu0 %v1315_v11, %s1732_s1 }
0x1f6b   :  { %v1319_v12 = vpop.permute.xlu1 %1318 }
0x1f6c   :  { %v1324_v13 = vmul.f32 %v1678_v55, %v1319_v12 }
0x1f6e   :  { %1328 = vrot.lane.b32.xlu1 %v1324_v13, %s1732_s1 }
0x1f6f   :  { %v1321_v14 = vpop.permute.xlu0 %1320 }
0x1f70   :  { %v1325_v15 = vmul.f32 %v1680_v58, %v1321_v14 }
0x1f72   :  { %1330 = vrot.lane.b32.xlu0 %v1325_v15, %s1732_s1 }
0x1fe0   :  { %v1329_v16 = vpop.permute.xlu1 %1328 }
0x1fe1   :  { %v1334_v17 = vadd.f32 %v1682_v6, %v1329_v16 }
0x1fe3   :  { %1340 = vrot.lane.b32.xlu1 %v1334_v17, %s1732_s1 }
0x1fe4   :  { %v1331_v18 = vpop.permute.xlu0 %1330 }
0x1fe5   :  { %v1335_v19 = vadd.f32 %v1684_v7, %v1331_v18 }
0x1fe7   :  { %1348 = vrot.lane.b32.xlu1 %v2031_v40, %s1733_s13  ;;  %1342 = vrot.lane.b32.xlu0 %v1335_v19, %s1732_s1 }
0x1feb   :  { %1350 = vrot.lane.b32.xlu0 %v2033_v41, %s1733_s13 }
0x2055   :  { %v1341_v20 = vpop.permute.xlu1 %1340 }
0x2059   :  { %v1349_v21 = vpop.permute.xlu1 %1348  ;;  %v1343_v22 = vpop.permute.xlu0 %1342 }
0x205a   :  { %v1354_v23 = vsel %vm1336_vm8, %v1341_v20, %v1349_v21 }
0x205b   :  { %1358 = vrot.lane.b32.xlu1 %v1354_v23, %s1732_s1 }
0x205d   :  { %v1351_v24 = vpop.permute.xlu0 %1350 }
0x205e   :  { %v1355_v25 = vsel %vm1337_vm9, %v1343_v22, %v1351_v24 }
0x205f   :  { %1360 = vrot.lane.b32.xlu0 %v1355_v25, %s1732_s1 }
0x20cd   :  { %v1359_v26 = vpop.permute.xlu1 %1358 }
0x20ce   :  { %1364 = vst.msk [vmem:[#allocation2] sm:$0xff] %vm27_vm0, %v1359_v26 }
0x20d1   :  { %v1361_v27 = vpop.permute.xlu0 %1360 }
0x20d2   :  { %1365 = vst.msk [vmem:[#allocation2 + $0x8] sm:$0xff] %vm27_vm0, %v1361_v27 }
0x20d3 PF:  { %v1456_v29 = vld [vmem:[%s2075_s3 + $0x1] ss:$0 sm:$0xff]  ;;  %v1457_v35 = vld [vmem:[%s2075_s3 + $0x2] ss:$0 sm:$0xff] }
0x20d5   :  { %v1366_v28 = vld [vmem:[#allocation2] sm:$0xff] }
0x20d6   :  { %v1374_v31 = vmul.f32 %v1456_v29, %v1366_v28 }
0x20d8   :  { %v1376_v33 = vsel %vm27_vm0, %v1374_v31, 0.0 }
0x20d9   :  { %v1367_v30 = vld [vmem:[#allocation2 + $0x8] sm:$0xff]  ;;  %1377 = vadd.xlane.f32.xlu0 %v1376_v33 }
0x20da   :  { %v1375_v32 = vmul.f32 %v1456_v29, %v1367_v30 }
0x20dc   :  { %v1379_v34 = vsel %vm27_vm0, %v1375_v32, 0.0  ;;  %vm1400_vm0 = vcmask 7168  }
0x20dd   :  { %1380 = vadd.xlane.f32.xlu0 %v1379_v34 }
0x2162   :  { %v1378_v36 = vpop.xlane.xlu0 %1377 }
0x2163   :  { %v1386_v37 = vadd.f32 %v1457_v35, %v1378_v36 }
0x2165   :  { %v1458_v38 = vmul.f32 -1.442695, %v1386_v37 }
0x2166   :  { %v1381_v39 = vpop.xlane.xlu0 %1380 }
0x2167   :  { %1685 = vpow2.f32 %v1458_v38  ;;  %v1387_v40 = vadd.f32 %v1457_v35, %v1381_v39 }
0x2169   :  { %v1459_v41 = vmul.f32 -1.442695, %v1387_v40 }
0x216b   :  { %1687 = vpow2.f32 %v1459_v41 }
0x2174   :  { %v1686_v2 = vpop.eup %1685 }
0x2175   :  { %v1394_v4 = vadd.f32 1.0, %v1686_v2 }
0x2177   :  { %1689 = vrcp.f32 %v1394_v4 }
0x2178   :  { %v1688_v42 = vpop.eup %1687 }
0x2179   :  { %v1395_v43 = vadd.f32 1.0, %v1688_v42 }
0x217b   :  { %1691 = vrcp.f32 %v1395_v43 }
0x2184   :  { %v1690_v44 = vpop.eup %1689 }
0x2185   :  { %1401 = vst.msk [vmem:[%s2076_s4] sm:$0xff] %vm1400_vm0, %v1690_v44 }
0x2188   :  { %v1692_v0 = vpop.eup %1691 }
0x2189   :  { %1402 = vst.msk [vmem:[%s2076_s4 + $0x8] sm:$0xff] %vm1400_vm0, %v1692_v0 }

</bundles_post_ra>
